<compile_context>
chip_gen: v7x
topology: tpu7x:2x2x1
jax: 0.10.0
libtpu: 0.0.40
codegen_flags: <defaults>
</compile_context>

<pallas_src>
import jax
import jax.numpy as jnp
from jax.experimental import pallas as pl
from jax.experimental.pallas import tpu as pltpu  # noqa: F401  (TPU backend)

# ---- model config (small, consistent with the module) ----
BATCH = 8
SEQ = 8
INPUT_DIM = 16
HIDDEN_DIM = 32
OUTPUT_DIM = 8
N_LAYERS = 2          # kernel is specialized to the 2-layer wavefront schedule

G4 = 4 * HIDDEN_DIM            # 128: gate width of one layer (i,f,g,o)
PW = 2 * G4                    # 256: both layers' gates / slab width
FCW_ROW = G4                   # 128: fc weight rows start
B12_ROW = G4 + HIDDEN_DIM      # 160: combined-bias row (8-aligned)
FCB_ROW = B12_ROW + 8          # 168: fc bias row (8-aligned)
SLAB_ROWS = FCB_ROW + 8        # 176


# ---------------- fused Pallas kernel ----------------

def make_lstm_net_kernel(seq_len, batch, hidden, in_dim):
    """Fused 2-layer LSTM (wavefront) + FC/ReLU head for fixed (T, B, H, D)."""
    T, B, H, D = seq_len, batch, hidden, in_dim
    f32 = jnp.float32

    def kernel(x_ref, hc_ref, p_ref, out_ref):
        # ---- unpack the parameter slab (all 8-aligned static row slices) ----
        # w_comb row layout (128 rows, 256 cols = [layer-1 gates | layer-2 gates]):
        #   rows 0:D      -> [Wih1^T | 0      ]   (x_t)
        #   rows D:D+H    -> [Whh1^T | Wih2^T ]   (h1_prev)
        #   rows D+H:D+2H -> [0      | Whh2^T ]   (h2_prev)
        w_comb = p_ref[0:G4, :]                            # (128, 256)
        fc_wt = p_ref[FCW_ROW:FCW_ROW + H, 0:G4]           # (32, 128) fc^T, lane-padded
        b12 = p_ref[B12_ROW:B12_ROW + 1, :]                # (1, 256) b_ih+b_hh, both layers
        fc_b = p_ref[FCB_ROW:FCB_ROW + 1, 0:G4]            # (1, 128) fc bias, lane-padded

        # ---- initial states, packed as [h1 | c1 | h2 | c2] ----
        hc = hc_ref[...]                                   # (B, 4H) = (8, 128)
        h1 = hc[:, 0:H]
        c1 = hc[:, H:2 * H]
        h2 = hc[:, 2 * H:3 * H]
        c2 = hc[:, 3 * H:4 * H]

        x2 = x_ref[...]                                    # (B, T*D) = (8, 128)

        # ---- single-tanh activation constants: sigmoid(z) = 0.5*tanh(z/2)+0.5
        # g-gate columns get tanh (scale 1, offset 0); i/f/o get the sigmoid form.
        col = jax.lax.broadcasted_iota(jnp.int32, (1, PW), 1)
        gate_idx = jnp.bitwise_and(jnp.right_shift(col, (H - 1).bit_length()), 3)
        is_g = gate_idx == 2
        t_scale = jnp.broadcast_to(jnp.where(is_g, 1.0, 0.5).astype(f32), (B, PW))
        a_off = jnp.broadcast_to(jnp.where(is_g, 0.0, 0.5).astype(f32), (B, PW))
        b12b = jnp.broadcast_to(b12, (B, PW))              # hoisted bias broadcast

        zpad = jnp.zeros((B, G4 - (D + 2 * H)), f32)       # (B, 48) LHS lane padding
        zx = jnp.zeros((B, D), f32)                        # dummy x for the last wave

        # ---- wavefront recurrence: T+1 waves, one fused MXU matmul per wave.
        # Wave w runs layer-1 step w (if w < T) and layer-2 step w-1 (if w >= 1);
        # layer-2 consumes layer-1's previous-wave output, so both halves of the
        # fused matmul are independent within a wave.
        for w in range(T + 1):
            x_w = x2[:, w * D:(w + 1) * D] if w < T else zx
            lhs = jnp.concatenate([x_w, h1, h2, zpad], axis=1)          # (B, 128)
            gg = jnp.dot(lhs, w_comb, preferred_element_type=f32) + b12b  # (B, 256)
            # one tanh pass over all 8 gate blocks of both layers
            acts = jnp.tanh(gg * t_scale) * t_scale + a_off

            if w < T:       # layer-1 step w
                c1 = acts[:, H:2 * H] * c1 + acts[:, 0:H] * acts[:, 2 * H:3 * H]
                h1 = acts[:, 3 * H:G4] * jnp.tanh(c1)
            if w >= 1:      # layer-2 step w-1
                c2 = (acts[:, G4 + H:G4 + 2 * H] * c2
                      + acts[:, G4:G4 + H] * acts[:, G4 + 2 * H:G4 + 3 * H])
                h2 = acts[:, G4 + 3 * H:PW] * jnp.tanh(c2)

        # ---- fused ReLU + FC head on the top layer's last hidden state ----
        fc_out = jnp.dot(jnp.maximum(h2, 0.0), fc_wt,
                         preferred_element_type=f32) + fc_b             # (B, 128)

        # ---- single lane-dense packed output: [h1_n|c1_n|h2_n|c2_n|fc_out] ----
        out_ref[...] = jnp.concatenate([h1, c1, h2, c2, fc_out],
                                       axis=1).astype(out_ref.dtype)

    return kernel


# ---------------- wrapper ----------------

@jax.jit
def lstm_net_forward(x, h0, c0, pslab):
    """Matches LSTMNet.forward(x, (h0, c0)) in eval mode.

    x: (B, T, INPUT_DIM) batch-first; h0/c0: (N_LAYERS, B, HIDDEN_DIM).
    pslab: packed parameter slab from pack_params().
    Returns (out (B, OUTPUT_DIM), (h_n, c_n)).
    """
    B, T, D = x.shape
    H = HIDDEN_DIM
    x2 = x.reshape(B, T * D)                               # free reshape, no transpose
    hc0 = jnp.concatenate([h0[0], c0[0], h0[1], c0[1]], axis=1)  # (B, 4H)

    flops = 2 * (T + 1) * B * G4 * PW + 2 * B * H * G4
    transcendentals = (T + 1) * B * PW + 2 * T * B * H
    bytes_accessed = 4 * (B * T * D + B * 4 * H + SLAB_ROWS * PW + B * PW)

    packed = pl.pallas_call(
        make_lstm_net_kernel(T, B, H, D),
        out_shape=jax.ShapeDtypeStruct((B, PW), jnp.float32),
        cost_estimate=pl.CostEstimate(flops=flops,
                                      transcendentals=transcendentals,
                                      bytes_accessed=bytes_accessed),
    )(x2, hc0, pslab)

    h_n = jnp.stack([packed[:, 0:H], packed[:, 2 * H:3 * H]])
    c_n = jnp.stack([packed[:, H:2 * H], packed[:, 3 * H:4 * H]])
    out = packed[:, 4 * H:4 * H + OUTPUT_DIM]
    return out, (h_n, c_n)


# ---------------- parameter init (PyTorch-style uniform) + packing ----------------

def init_params(key):
    bound = 1.0 / (HIDDEN_DIM ** 0.5)
    raw = {"lstm": []}
    for l in range(N_LAYERS):
        d_in = INPUT_DIM if l == 0 else HIDDEN_DIM
        key, k1, k2, k3, k4 = jax.random.split(key, 5)
        w_ih = jax.random.uniform(k1, (4 * HIDDEN_DIM, d_in), jnp.float32, -bound, bound)
        w_hh = jax.random.uniform(k2, (4 * HIDDEN_DIM, HIDDEN_DIM), jnp.float32, -bound, bound)
        b_ih = jax.random.uniform(k3, (4 * HIDDEN_DIM,), jnp.float32, -bound, bound)
        b_hh = jax.random.uniform(k4, (4 * HIDDEN_DIM,), jnp.float32, -bound, bound)
        raw["lstm"].append((w_ih, w_hh, b_ih, b_hh))
    key, k5, k6 = jax.random.split(key, 3)
    raw["fc_w"] = jax.random.uniform(k5, (OUTPUT_DIM, HIDDEN_DIM), jnp.float32, -bound, bound)
    raw["fc_b"] = jax.random.uniform(k6, (OUTPUT_DIM,), jnp.float32, -bound, bound)
    return raw


def pack_params(raw):
    """Pack all weights/biases into one (SLAB_ROWS, 256) slab (done once)."""
    H, D = HIDDEN_DIM, INPUT_DIM
    w_ih0, w_hh0, b_ih0, b_hh0 = raw["lstm"][0]
    w_ih1, w_hh1, b_ih1, b_hh1 = raw["lstm"][1]
    slab = jnp.zeros((SLAB_ROWS, PW), jnp.float32)
    # fused recurrence weights (block structure, see kernel comment)
    slab = slab.at[0:D, 0:G4].set(w_ih0.T)
    slab = slab.at[D:D + H, 0:G4].set(w_hh0.T)
    slab = slab.at[D:D + H, G4:PW].set(w_ih1.T)
    slab = slab.at[D + H:D + 2 * H, G4:PW].set(w_hh1.T)
    # FC head (lane-padded)
    slab = slab.at[FCW_ROW:FCW_ROW + H, 0:OUTPUT_DIM].set(raw["fc_w"].T)
    slab = slab.at[FCB_ROW, 0:OUTPUT_DIM].set(raw["fc_b"])
    # combined biases [b1 | b2]
    slab = slab.at[B12_ROW, :].set(jnp.concatenate([b_ih0 + b_hh0, b_ih1 + b_hh1]))
    return slab


# ---------------- pure-JAX reference for verification ----------------

def reference_forward(x, h0, c0, raw):
    H = HIDDEN_DIM
    layer_in = x  # (B, T, D)
    h_fin, c_fin = [], []
    for l in range(N_LAYERS):
        w_ih, w_hh, b_ih, b_hh = raw["lstm"][l]
        h, c = h0[l], c0[l]
        outs = []
        for t in range(layer_in.shape[1]):
            g = layer_in[:, t] @ w_ih.T + h @ w_hh.T + b_ih + b_hh
            i_g = jax.nn.sigmoid(g[:, 0 * H:1 * H])
            f_g = jax.nn.sigmoid(g[:, 1 * H:2 * H])
            g_g = jnp.tanh(g[:, 2 * H:3 * H])
            o_g = jax.nn.sigmoid(g[:, 3 * H:4 * H])
            c = f_g * c + i_g * g_g
            h = o_g * jnp.tanh(c)
            outs.append(h)
        layer_in = jnp.stack(outs, axis=1)
        h_fin.append(h)
        c_fin.append(c)
    out = jnp.maximum(layer_in[:, -1], 0.0) @ raw["fc_w"].T + raw["fc_b"]
    return out, (jnp.stack(h_fin), jnp.stack(c_fin))


if __name__ == "__main__":
    key = jax.random.PRNGKey(0)
    key, kx = jax.random.split(key)
    x = jax.random.normal(kx, (BATCH, SEQ, INPUT_DIM), jnp.float32)
    # init_hidden: zeros of shape (n_layers, batch, hidden)
    h0 = jnp.zeros((N_LAYERS, BATCH, HIDDEN_DIM), jnp.float32)
    c0 = jnp.zeros((N_LAYERS, BATCH, HIDDEN_DIM), jnp.float32)
    raw = init_params(key)
    pslab = pack_params(raw)

    out, (h_n, c_n) = lstm_net_forward(x, h0, c0, pslab)
    jax.block_until_ready((out, h_n, c_n))

    ref_out, (ref_h, ref_c) = reference_forward(x, h0, c0, raw)
    # Loose-ish tolerance: MXU default-precision matmul passes + the fused
    # gate grouping differ slightly from the XLA reference over 2*T steps.
    assert jnp.allclose(out, ref_out, atol=1e-2, rtol=1e-2)
    assert jnp.allclose(h_n, ref_h, atol=1e-2, rtol=1e-2)
    assert jnp.allclose(c_n, ref_c, atol=1e-2, rtol=1e-2)

    print("KERNEL_OK")
</pallas_src>

<mosaic_0001>
module attributes {stable_mosaic.version = 11 : i64} {
  func.func @kernel(%arg0: memref<8x128xf32, #tpu.memory_space<vmem>>, %arg1: memref<8x128xf32, #tpu.memory_space<vmem>>, %arg2: memref<176x256xf32, #tpu.memory_space<vmem>>, %arg3: memref<8x256xf32, #tpu.memory_space<vmem>>) attributes {dimension_semantics = [], scalar_prefetch = 0 : i64, scratch_operands = 0 : i64, tpu.core_type = #tpu.core_type<tc>} {
    %c0 = arith.constant 0 : index
    %c0_0 = arith.constant 0 : index
    %0 = vector.load %arg2[%c0, %c0_0] : memref<176x256xf32, #tpu.memory_space<vmem>>, vector<128x256xf32>
    %c128 = arith.constant 128 : index
    %c0_1 = arith.constant 0 : index
    %1 = vector.load %arg2[%c128, %c0_1] : memref<176x256xf32, #tpu.memory_space<vmem>>, vector<32x128xf32>
    %c160 = arith.constant 160 : index
    %c0_2 = arith.constant 0 : index
    %2 = vector.load %arg2[%c160, %c0_2] : memref<176x256xf32, #tpu.memory_space<vmem>>, vector<1x256xf32>
    %c168 = arith.constant 168 : index
    %c0_3 = arith.constant 0 : index
    %3 = vector.load %arg2[%c168, %c0_3] : memref<176x256xf32, #tpu.memory_space<vmem>>, vector<1x128xf32>
    %c0_4 = arith.constant 0 : index
    %c0_5 = arith.constant 0 : index
    %4 = vector.load %arg1[%c0_4, %c0_5] : memref<8x128xf32, #tpu.memory_space<vmem>>, vector<8x128xf32>
    %5 = vector.extract_strided_slice %4 {offsets = [0, 0], sizes = [8, 32], strides = [1, 1]} : vector<8x128xf32> to vector<8x32xf32>
    %6 = vector.extract_strided_slice %4 {offsets = [0, 32], sizes = [8, 32], strides = [1, 1]} : vector<8x128xf32> to vector<8x32xf32>
    %7 = vector.extract_strided_slice %4 {offsets = [0, 64], sizes = [8, 32], strides = [1, 1]} : vector<8x128xf32> to vector<8x32xf32>
    %8 = vector.extract_strided_slice %4 {offsets = [0, 96], sizes = [8, 32], strides = [1, 1]} : vector<8x128xf32> to vector<8x32xf32>
    %c0_6 = arith.constant 0 : index
    %c0_7 = arith.constant 0 : index
    %9 = vector.load %arg0[%c0_6, %c0_7] : memref<8x128xf32, #tpu.memory_space<vmem>>, vector<8x128xf32>
    %10 = tpu.iota {dimensions = array<i32: 1>} : vector<1x256xi32>
    %c5_i32 = arith.constant 5 : i32
    %11 = vector.broadcast %c5_i32 : i32 to vector<1x256xi32>
    %12 = arith.shrsi %10, %11 : vector<1x256xi32>
    %c3_i32 = arith.constant 3 : i32
    %13 = vector.broadcast %c3_i32 : i32 to vector<1x256xi32>
    %14 = arith.andi %12, %13 : vector<1x256xi32>
    %c2_i32 = arith.constant 2 : i32
    %15 = vector.broadcast %c2_i32 : i32 to vector<1x256xi32>
    %16 = arith.cmpi eq, %14, %15 : vector<1x256xi32>
    %cst = arith.constant 1.000000e+00 : f32
    %cst_8 = arith.constant 5.000000e-01 : f32
    %17 = vector.broadcast %cst : f32 to vector<1x256xf32>
    %18 = vector.broadcast %cst_8 : f32 to vector<1x256xf32>
    %19 = arith.select %16, %17, %18 : vector<1x256xi1>, vector<1x256xf32>
    %20 = vector.shape_cast %19 : vector<1x256xf32> to vector<1x256xf32>
    %21 = vector.broadcast %20 : vector<1x256xf32> to vector<8x256xf32>
    %cst_9 = arith.constant 0.000000e+00 : f32
    %cst_10 = arith.constant 5.000000e-01 : f32
    %22 = vector.broadcast %cst_9 : f32 to vector<1x256xf32>
    %23 = vector.broadcast %cst_10 : f32 to vector<1x256xf32>
    %24 = arith.select %16, %22, %23 : vector<1x256xi1>, vector<1x256xf32>
    %25 = vector.shape_cast %24 : vector<1x256xf32> to vector<1x256xf32>
    %26 = vector.broadcast %25 : vector<1x256xf32> to vector<8x256xf32>
    %27 = vector.shape_cast %2 : vector<1x256xf32> to vector<1x256xf32>
    %28 = vector.broadcast %27 : vector<1x256xf32> to vector<8x256xf32>
    %cst_11 = arith.constant 0.000000e+00 : f32
    %29 = vector.broadcast %cst_11 : f32 to vector<8x48xf32>
    %cst_12 = arith.constant 0.000000e+00 : f32
    %30 = vector.broadcast %cst_12 : f32 to vector<8x16xf32>
    %31 = vector.extract_strided_slice %9 {offsets = [0, 0], sizes = [8, 16], strides = [1, 1]} : vector<8x128xf32> to vector<8x16xf32>
    %32 = tpu.concatenate %31, %5, %7, %29 in 1 : vector<8x16xf32>, vector<8x32xf32>, vector<8x32xf32>, vector<8x48xf32> -> vector<8x128xf32>
    %cst_13 = arith.constant dense<0.000000e+00> : vector<8x256xf32>
    %33 = tpu.matmul %32, %0, %cst_13 {dimension_numbers = #tpu.dot_dimension_numbers<[1], [0], [0], [1], [0, 0, 1, 1], [], []>} : vector<8x128xf32>, vector<128x256xf32>, vector<8x256xf32> -> vector<8x256xf32>
    %34 = arith.addf %33, %28 : vector<8x256xf32>
    %35 = arith.mulf %34, %21 : vector<8x256xf32>
    %36 = math.tanh %35 : vector<8x256xf32>
    %37 = arith.mulf %36, %21 : vector<8x256xf32>
    %38 = arith.addf %37, %26 : vector<8x256xf32>
    %39 = vector.extract_strided_slice %38 {offsets = [0, 32], sizes = [8, 32], strides = [1, 1]} : vector<8x256xf32> to vector<8x32xf32>
    %40 = arith.mulf %39, %6 : vector<8x32xf32>
    %41 = vector.extract_strided_slice %38 {offsets = [0, 0], sizes = [8, 32], strides = [1, 1]} : vector<8x256xf32> to vector<8x32xf32>
    %42 = vector.extract_strided_slice %38 {offsets = [0, 64], sizes = [8, 32], strides = [1, 1]} : vector<8x256xf32> to vector<8x32xf32>
    %43 = arith.mulf %41, %42 : vector<8x32xf32>
    %44 = arith.addf %40, %43 : vector<8x32xf32>
    %45 = vector.extract_strided_slice %38 {offsets = [0, 96], sizes = [8, 32], strides = [1, 1]} : vector<8x256xf32> to vector<8x32xf32>
    %46 = math.tanh %44 : vector<8x32xf32>
    %47 = arith.mulf %45, %46 : vector<8x32xf32>
    %48 = vector.extract_strided_slice %9 {offsets = [0, 16], sizes = [8, 16], strides = [1, 1]} : vector<8x128xf32> to vector<8x16xf32>
    %49 = tpu.concatenate %48, %47, %7, %29 in 1 : vector<8x16xf32>, vector<8x32xf32>, vector<8x32xf32>, vector<8x48xf32> -> vector<8x128xf32>
    %cst_14 = arith.constant dense<0.000000e+00> : vector<8x256xf32>
    %50 = tpu.matmul %49, %0, %cst_14 {dimension_numbers = #tpu.dot_dimension_numbers<[1], [0], [0], [1], [0, 0, 1, 1], [], []>} : vector<8x128xf32>, vector<128x256xf32>, vector<8x256xf32> -> vector<8x256xf32>
    %51 = arith.addf %50, %28 : vector<8x256xf32>
    %52 = arith.mulf %51, %21 : vector<8x256xf32>
    %53 = math.tanh %52 : vector<8x256xf32>
    %54 = arith.mulf %53, %21 : vector<8x256xf32>
    %55 = arith.addf %54, %26 : vector<8x256xf32>
    %56 = vector.extract_strided_slice %55 {offsets = [0, 32], sizes = [8, 32], strides = [1, 1]} : vector<8x256xf32> to vector<8x32xf32>
    %57 = arith.mulf %56, %44 : vector<8x32xf32>
    %58 = vector.extract_strided_slice %55 {offsets = [0, 0], sizes = [8, 32], strides = [1, 1]} : vector<8x256xf32> to vector<8x32xf32>
    %59 = vector.extract_strided_slice %55 {offsets = [0, 64], sizes = [8, 32], strides = [1, 1]} : vector<8x256xf32> to vector<8x32xf32>
    %60 = arith.mulf %58, %59 : vector<8x32xf32>
    %61 = arith.addf %57, %60 : vector<8x32xf32>
    %62 = vector.extract_strided_slice %55 {offsets = [0, 96], sizes = [8, 32], strides = [1, 1]} : vector<8x256xf32> to vector<8x32xf32>
    %63 = math.tanh %61 : vector<8x32xf32>
    %64 = arith.mulf %62, %63 : vector<8x32xf32>
    %65 = vector.extract_strided_slice %55 {offsets = [0, 160], sizes = [8, 32], strides = [1, 1]} : vector<8x256xf32> to vector<8x32xf32>
    %66 = arith.mulf %65, %8 : vector<8x32xf32>
    %67 = vector.extract_strided_slice %55 {offsets = [0, 128], sizes = [8, 32], strides = [1, 1]} : vector<8x256xf32> to vector<8x32xf32>
    %68 = vector.extract_strided_slice %55 {offsets = [0, 192], sizes = [8, 32], strides = [1, 1]} : vector<8x256xf32> to vector<8x32xf32>
    %69 = arith.mulf %67, %68 : vector<8x32xf32>
    %70 = arith.addf %66, %69 : vector<8x32xf32>
    %71 = vector.extract_strided_slice %55 {offsets = [0, 224], sizes = [8, 32], strides = [1, 1]} : vector<8x256xf32> to vector<8x32xf32>
    %72 = math.tanh %70 : vector<8x32xf32>
    %73 = arith.mulf %71, %72 : vector<8x32xf32>
    %74 = vector.extract_strided_slice %9 {offsets = [0, 32], sizes = [8, 16], strides = [1, 1]} : vector<8x128xf32> to vector<8x16xf32>
    %75 = tpu.concatenate %74, %64, %73, %29 in 1 : vector<8x16xf32>, vector<8x32xf32>, vector<8x32xf32>, vector<8x48xf32> -> vector<8x128xf32>
    %cst_15 = arith.constant dense<0.000000e+00> : vector<8x256xf32>
    %76 = tpu.matmul %75, %0, %cst_15 {dimension_numbers = #tpu.dot_dimension_numbers<[1], [0], [0], [1], [0, 0, 1, 1], [], []>} : vector<8x128xf32>, vector<128x256xf32>, vector<8x256xf32> -> vector<8x256xf32>
    %77 = arith.addf %76, %28 : vector<8x256xf32>
    %78 = arith.mulf %77, %21 : vector<8x256xf32>
    %79 = math.tanh %78 : vector<8x256xf32>
    %80 = arith.mulf %79, %21 : vector<8x256xf32>
    %81 = arith.addf %80, %26 : vector<8x256xf32>
    %82 = vector.extract_strided_slice %81 {offsets = [0, 32], sizes = [8, 32], strides = [1, 1]} : vector<8x256xf32> to vector<8x32xf32>
    %83 = arith.mulf %82, %61 : vector<8x32xf32>
    %84 = vector.extract_strided_slice %81 {offsets = [0, 0], sizes = [8, 32], strides = [1, 1]} : vector<8x256xf32> to vector<8x32xf32>
    %85 = vector.extract_strided_slice %81 {offsets = [0, 64], sizes = [8, 32], strides = [1, 1]} : vector<8x256xf32> to vector<8x32xf32>
    %86 = arith.mulf %84, %85 : vector<8x32xf32>
    %87 = arith.addf %83, %86 : vector<8x32xf32>
    %88 = vector.extract_strided_slice %81 {offsets = [0, 96], sizes = [8, 32], strides = [1, 1]} : vector<8x256xf32> to vector<8x32xf32>
    %89 = math.tanh %87 : vector<8x32xf32>
    %90 = arith.mulf %88, %89 : vector<8x32xf32>
    %91 = vector.extract_strided_slice %81 {offsets = [0, 160], sizes = [8, 32], strides = [1, 1]} : vector<8x256xf32> to vector<8x32xf32>
    %92 = arith.mulf %91, %70 : vector<8x32xf32>
    %93 = vector.extract_strided_slice %81 {offsets = [0, 128], sizes = [8, 32], strides = [1, 1]} : vector<8x256xf32> to vector<8x32xf32>
    %94 = vector.extract_strided_slice %81 {offsets = [0, 192], sizes = [8, 32], strides = [1, 1]} : vector<8x256xf32> to vector<8x32xf32>
    %95 = arith.mulf %93, %94 : vector<8x32xf32>
    %96 = arith.addf %92, %95 : vector<8x32xf32>
    %97 = vector.extract_strided_slice %81 {offsets = [0, 224], sizes = [8, 32], strides = [1, 1]} : vector<8x256xf32> to vector<8x32xf32>
    %98 = math.tanh %96 : vector<8x32xf32>
    %99 = arith.mulf %97, %98 : vector<8x32xf32>
    %100 = vector.extract_strided_slice %9 {offsets = [0, 48], sizes = [8, 16], strides = [1, 1]} : vector<8x128xf32> to vector<8x16xf32>
    %101 = tpu.concatenate %100, %90, %99, %29 in 1 : vector<8x16xf32>, vector<8x32xf32>, vector<8x32xf32>, vector<8x48xf32> -> vector<8x128xf32>
    %cst_16 = arith.constant dense<0.000000e+00> : vector<8x256xf32>
    %102 = tpu.matmul %101, %0, %cst_16 {dimension_numbers = #tpu.dot_dimension_numbers<[1], [0], [0], [1], [0, 0, 1, 1], [], []>} : vector<8x128xf32>, vector<128x256xf32>, vector<8x256xf32> -> vector<8x256xf32>
    %103 = arith.addf %102, %28 : vector<8x256xf32>
    %104 = arith.mulf %103, %21 : vector<8x256xf32>
    %105 = math.tanh %104 : vector<8x256xf32>
    %106 = arith.mulf %105, %21 : vector<8x256xf32>
    %107 = arith.addf %106, %26 : vector<8x256xf32>
    %108 = vector.extract_strided_slice %107 {offsets = [0, 32], sizes = [8, 32], strides = [1, 1]} : vector<8x256xf32> to vector<8x32xf32>
    %109 = arith.mulf %108, %87 : vector<8x32xf32>
    %110 = vector.extract_strided_slice %107 {offsets = [0, 0], sizes = [8, 32], strides = [1, 1]} : vector<8x256xf32> to vector<8x32xf32>
    %111 = vector.extract_strided_slice %107 {offsets = [0, 64], sizes = [8, 32], strides = [1, 1]} : vector<8x256xf32> to vector<8x32xf32>
    %112 = arith.mulf %110, %111 : vector<8x32xf32>
    %113 = arith.addf %109, %112 : vector<8x32xf32>
    %114 = vector.extract_strided_slice %107 {offsets = [0, 96], sizes = [8, 32], strides = [1, 1]} : vector<8x256xf32> to vector<8x32xf32>
    %115 = math.tanh %113 : vector<8x32xf32>
    %116 = arith.mulf %114, %115 : vector<8x32xf32>
    %117 = vector.extract_strided_slice %107 {offsets = [0, 160], sizes = [8, 32], strides = [1, 1]} : vector<8x256xf32> to vector<8x32xf32>
    %118 = arith.mulf %117, %96 : vector<8x32xf32>
    %119 = vector.extract_strided_slice %107 {offsets = [0, 128], sizes = [8, 32], strides = [1, 1]} : vector<8x256xf32> to vector<8x32xf32>
    %120 = vector.extract_strided_slice %107 {offsets = [0, 192], sizes = [8, 32], strides = [1, 1]} : vector<8x256xf32> to vector<8x32xf32>
    %121 = arith.mulf %119, %120 : vector<8x32xf32>
    %122 = arith.addf %118, %121 : vector<8x32xf32>
    %123 = vector.extract_strided_slice %107 {offsets = [0, 224], sizes = [8, 32], strides = [1, 1]} : vector<8x256xf32> to vector<8x32xf32>
    %124 = math.tanh %122 : vector<8x32xf32>
    %125 = arith.mulf %123, %124 : vector<8x32xf32>
    %126 = vector.extract_strided_slice %9 {offsets = [0, 64], sizes = [8, 16], strides = [1, 1]} : vector<8x128xf32> to vector<8x16xf32>
    %127 = tpu.concatenate %126, %116, %125, %29 in 1 : vector<8x16xf32>, vector<8x32xf32>, vector<8x32xf32>, vector<8x48xf32> -> vector<8x128xf32>
    %cst_17 = arith.constant dense<0.000000e+00> : vector<8x256xf32>
    %128 = tpu.matmul %127, %0, %cst_17 {dimension_numbers = #tpu.dot_dimension_numbers<[1], [0], [0], [1], [0, 0, 1, 1], [], []>} : vector<8x128xf32>, vector<128x256xf32>, vector<8x256xf32> -> vector<8x256xf32>
    %129 = arith.addf %128, %28 : vector<8x256xf32>
    %130 = arith.mulf %129, %21 : vector<8x256xf32>
    %131 = math.tanh %130 : vector<8x256xf32>
    %132 = arith.mulf %131, %21 : vector<8x256xf32>
    %133 = arith.addf %132, %26 : vector<8x256xf32>
    %134 = vector.extract_strided_slice %133 {offsets = [0, 32], sizes = [8, 32], strides = [1, 1]} : vector<8x256xf32> to vector<8x32xf32>
    %135 = arith.mulf %134, %113 : vector<8x32xf32>
    %136 = vector.extract_strided_slice %133 {offsets = [0, 0], sizes = [8, 32], strides = [1, 1]} : vector<8x256xf32> to vector<8x32xf32>
    %137 = vector.extract_strided_slice %133 {offsets = [0, 64], sizes = [8, 32], strides = [1, 1]} : vector<8x256xf32> to vector<8x32xf32>
    %138 = arith.mulf %136, %137 : vector<8x32xf32>
    %139 = arith.addf %135, %138 : vector<8x32xf32>
    %140 = vector.extract_strided_slice %133 {offsets = [0, 96], sizes = [8, 32], strides = [1, 1]} : vector<8x256xf32> to vector<8x32xf32>
    %141 = math.tanh %139 : vector<8x32xf32>
    %142 = arith.mulf %140, %141 : vector<8x32xf32>
    %143 = vector.extract_strided_slice %133 {offsets = [0, 160], sizes = [8, 32], strides = [1, 1]} : vector<8x256xf32> to vector<8x32xf32>
    %144 = arith.mulf %143, %122 : vector<8x32xf32>
    %145 = vector.extract_strided_slice %133 {offsets = [0, 128], sizes = [8, 32], strides = [1, 1]} : vector<8x256xf32> to vector<8x32xf32>
    %146 = vector.extract_strided_slice %133 {offsets = [0, 192], sizes = [8, 32], strides = [1, 1]} : vector<8x256xf32> to vector<8x32xf32>
    %147 = arith.mulf %145, %146 : vector<8x32xf32>
    %148 = arith.addf %144, %147 : vector<8x32xf32>
    %149 = vector.extract_strided_slice %133 {offsets = [0, 224], sizes = [8, 32], strides = [1, 1]} : vector<8x256xf32> to vector<8x32xf32>
    %150 = math.tanh %148 : vector<8x32xf32>
    %151 = arith.mulf %149, %150 : vector<8x32xf32>
    %152 = vector.extract_strided_slice %9 {offsets = [0, 80], sizes = [8, 16], strides = [1, 1]} : vector<8x128xf32> to vector<8x16xf32>
    %153 = tpu.concatenate %152, %142, %151, %29 in 1 : vector<8x16xf32>, vector<8x32xf32>, vector<8x32xf32>, vector<8x48xf32> -> vector<8x128xf32>
    %cst_18 = arith.constant dense<0.000000e+00> : vector<8x256xf32>
    %154 = tpu.matmul %153, %0, %cst_18 {dimension_numbers = #tpu.dot_dimension_numbers<[1], [0], [0], [1], [0, 0, 1, 1], [], []>} : vector<8x128xf32>, vector<128x256xf32>, vector<8x256xf32> -> vector<8x256xf32>
    %155 = arith.addf %154, %28 : vector<8x256xf32>
    %156 = arith.mulf %155, %21 : vector<8x256xf32>
    %157 = math.tanh %156 : vector<8x256xf32>
    %158 = arith.mulf %157, %21 : vector<8x256xf32>
    %159 = arith.addf %158, %26 : vector<8x256xf32>
    %160 = vector.extract_strided_slice %159 {offsets = [0, 32], sizes = [8, 32], strides = [1, 1]} : vector<8x256xf32> to vector<8x32xf32>
    %161 = arith.mulf %160, %139 : vector<8x32xf32>
    %162 = vector.extract_strided_slice %159 {offsets = [0, 0], sizes = [8, 32], strides = [1, 1]} : vector<8x256xf32> to vector<8x32xf32>
    %163 = vector.extract_strided_slice %159 {offsets = [0, 64], sizes = [8, 32], strides = [1, 1]} : vector<8x256xf32> to vector<8x32xf32>
    %164 = arith.mulf %162, %163 : vector<8x32xf32>
    %165 = arith.addf %161, %164 : vector<8x32xf32>
    %166 = vector.extract_strided_slice %159 {offsets = [0, 96], sizes = [8, 32], strides = [1, 1]} : vector<8x256xf32> to vector<8x32xf32>
    %167 = math.tanh %165 : vector<8x32xf32>
    %168 = arith.mulf %166, %167 : vector<8x32xf32>
    %169 = vector.extract_strided_slice %159 {offsets = [0, 160], sizes = [8, 32], strides = [1, 1]} : vector<8x256xf32> to vector<8x32xf32>
    %170 = arith.mulf %169, %148 : vector<8x32xf32>
    %171 = vector.extract_strided_slice %159 {offsets = [0, 128], sizes = [8, 32], strides = [1, 1]} : vector<8x256xf32> to vector<8x32xf32>
    %172 = vector.extract_strided_slice %159 {offsets = [0, 192], sizes = [8, 32], strides = [1, 1]} : vector<8x256xf32> to vector<8x32xf32>
    %173 = arith.mulf %171, %172 : vector<8x32xf32>
    %174 = arith.addf %170, %173 : vector<8x32xf32>
    %175 = vector.extract_strided_slice %159 {offsets = [0, 224], sizes = [8, 32], strides = [1, 1]} : vector<8x256xf32> to vector<8x32xf32>
    %176 = math.tanh %174 : vector<8x32xf32>
    %177 = arith.mulf %175, %176 : vector<8x32xf32>
    %178 = vector.extract_strided_slice %9 {offsets = [0, 96], sizes = [8, 16], strides = [1, 1]} : vector<8x128xf32> to vector<8x16xf32>
    %179 = tpu.concatenate %178, %168, %177, %29 in 1 : vector<8x16xf32>, vector<8x32xf32>, vector<8x32xf32>, vector<8x48xf32> -> vector<8x128xf32>
    %cst_19 = arith.constant dense<0.000000e+00> : vector<8x256xf32>
    %180 = tpu.matmul %179, %0, %cst_19 {dimension_numbers = #tpu.dot_dimension_numbers<[1], [0], [0], [1], [0, 0, 1, 1], [], []>} : vector<8x128xf32>, vector<128x256xf32>, vector<8x256xf32> -> vector<8x256xf32>
    %181 = arith.addf %180, %28 : vector<8x256xf32>
    %182 = arith.mulf %181, %21 : vector<8x256xf32>
    %183 = math.tanh %182 : vector<8x256xf32>
    %184 = arith.mulf %183, %21 : vector<8x256xf32>
    %185 = arith.addf %184, %26 : vector<8x256xf32>
    %186 = vector.extract_strided_slice %185 {offsets = [0, 32], sizes = [8, 32], strides = [1, 1]} : vector<8x256xf32> to vector<8x32xf32>
    %187 = arith.mulf %186, %165 : vector<8x32xf32>
    %188 = vector.extract_strided_slice %185 {offsets = [0, 0], sizes = [8, 32], strides = [1, 1]} : vector<8x256xf32> to vector<8x32xf32>
    %189 = vector.extract_strided_slice %185 {offsets = [0, 64], sizes = [8, 32], strides = [1, 1]} : vector<8x256xf32> to vector<8x32xf32>
    %190 = arith.mulf %188, %189 : vector<8x32xf32>
    %191 = arith.addf %187, %190 : vector<8x32xf32>
    %192 = vector.extract_strided_slice %185 {offsets = [0, 96], sizes = [8, 32], strides = [1, 1]} : vector<8x256xf32> to vector<8x32xf32>
    %193 = math.tanh %191 : vector<8x32xf32>
    %194 = arith.mulf %192, %193 : vector<8x32xf32>
    %195 = vector.extract_strided_slice %185 {offsets = [0, 160], sizes = [8, 32], strides = [1, 1]} : vector<8x256xf32> to vector<8x32xf32>
    %196 = arith.mulf %195, %174 : vector<8x32xf32>
    %197 = vector.extract_strided_slice %185 {offsets = [0, 128], sizes = [8, 32], strides = [1, 1]} : vector<8x256xf32> to vector<8x32xf32>
    %198 = vector.extract_strided_slice %185 {offsets = [0, 192], sizes = [8, 32], strides = [1, 1]} : vector<8x256xf32> to vector<8x32xf32>
    %199 = arith.mulf %197, %198 : vector<8x32xf32>
    %200 = arith.addf %196, %199 : vector<8x32xf32>
    %201 = vector.extract_strided_slice %185 {offsets = [0, 224], sizes = [8, 32], strides = [1, 1]} : vector<8x256xf32> to vector<8x32xf32>
    %202 = math.tanh %200 : vector<8x32xf32>
    %203 = arith.mulf %201, %202 : vector<8x32xf32>
    %204 = vector.extract_strided_slice %9 {offsets = [0, 112], sizes = [8, 16], strides = [1, 1]} : vector<8x128xf32> to vector<8x16xf32>
    %205 = tpu.concatenate %204, %194, %203, %29 in 1 : vector<8x16xf32>, vector<8x32xf32>, vector<8x32xf32>, vector<8x48xf32> -> vector<8x128xf32>
    %cst_20 = arith.constant dense<0.000000e+00> : vector<8x256xf32>
    %206 = tpu.matmul %205, %0, %cst_20 {dimension_numbers = #tpu.dot_dimension_numbers<[1], [0], [0], [1], [0, 0, 1, 1], [], []>} : vector<8x128xf32>, vector<128x256xf32>, vector<8x256xf32> -> vector<8x256xf32>
    %207 = arith.addf %206, %28 : vector<8x256xf32>
    %208 = arith.mulf %207, %21 : vector<8x256xf32>
    %209 = math.tanh %208 : vector<8x256xf32>
    %210 = arith.mulf %209, %21 : vector<8x256xf32>
    %211 = arith.addf %210, %26 : vector<8x256xf32>
    %212 = vector.extract_strided_slice %211 {offsets = [0, 32], sizes = [8, 32], strides = [1, 1]} : vector<8x256xf32> to vector<8x32xf32>
    %213 = arith.mulf %212, %191 : vector<8x32xf32>
    %214 = vector.extract_strided_slice %211 {offsets = [0, 0], sizes = [8, 32], strides = [1, 1]} : vector<8x256xf32> to vector<8x32xf32>
    %215 = vector.extract_strided_slice %211 {offsets = [0, 64], sizes = [8, 32], strides = [1, 1]} : vector<8x256xf32> to vector<8x32xf32>
    %216 = arith.mulf %214, %215 : vector<8x32xf32>
    %217 = arith.addf %213, %216 : vector<8x32xf32>
    %218 = vector.extract_strided_slice %211 {offsets = [0, 96], sizes = [8, 32], strides = [1, 1]} : vector<8x256xf32> to vector<8x32xf32>
    %219 = math.tanh %217 : vector<8x32xf32>
    %220 = arith.mulf %218, %219 : vector<8x32xf32>
    %221 = vector.extract_strided_slice %211 {offsets = [0, 160], sizes = [8, 32], strides = [1, 1]} : vector<8x256xf32> to vector<8x32xf32>
    %222 = arith.mulf %221, %200 : vector<8x32xf32>
    %223 = vector.extract_strided_slice %211 {offsets = [0, 128], sizes = [8, 32], strides = [1, 1]} : vector<8x256xf32> to vector<8x32xf32>
    %224 = vector.extract_strided_slice %211 {offsets = [0, 192], sizes = [8, 32], strides = [1, 1]} : vector<8x256xf32> to vector<8x32xf32>
    %225 = arith.mulf %223, %224 : vector<8x32xf32>
    %226 = arith.addf %222, %225 : vector<8x32xf32>
    %227 = vector.extract_strided_slice %211 {offsets = [0, 224], sizes = [8, 32], strides = [1, 1]} : vector<8x256xf32> to vector<8x32xf32>
    %228 = math.tanh %226 : vector<8x32xf32>
    %229 = arith.mulf %227, %228 : vector<8x32xf32>
    %230 = tpu.concatenate %30, %220, %229, %29 in 1 : vector<8x16xf32>, vector<8x32xf32>, vector<8x32xf32>, vector<8x48xf32> -> vector<8x128xf32>
    %cst_21 = arith.constant dense<0.000000e+00> : vector<8x256xf32>
    %231 = tpu.matmul %230, %0, %cst_21 {dimension_numbers = #tpu.dot_dimension_numbers<[1], [0], [0], [1], [0, 0, 1, 1], [], []>} : vector<8x128xf32>, vector<128x256xf32>, vector<8x256xf32> -> vector<8x256xf32>
    %232 = arith.addf %231, %28 : vector<8x256xf32>
    %233 = arith.mulf %232, %21 : vector<8x256xf32>
    %234 = math.tanh %233 : vector<8x256xf32>
    %235 = arith.mulf %234, %21 : vector<8x256xf32>
    %236 = arith.addf %235, %26 : vector<8x256xf32>
    %237 = vector.extract_strided_slice %236 {offsets = [0, 160], sizes = [8, 32], strides = [1, 1]} : vector<8x256xf32> to vector<8x32xf32>
    %238 = arith.mulf %237, %226 : vector<8x32xf32>
    %239 = vector.extract_strided_slice %236 {offsets = [0, 128], sizes = [8, 32], strides = [1, 1]} : vector<8x256xf32> to vector<8x32xf32>
    %240 = vector.extract_strided_slice %236 {offsets = [0, 192], sizes = [8, 32], strides = [1, 1]} : vector<8x256xf32> to vector<8x32xf32>
    %241 = arith.mulf %239, %240 : vector<8x32xf32>
    %242 = arith.addf %238, %241 : vector<8x32xf32>
    %243 = vector.extract_strided_slice %236 {offsets = [0, 224], sizes = [8, 32], strides = [1, 1]} : vector<8x256xf32> to vector<8x32xf32>
    %244 = math.tanh %242 : vector<8x32xf32>
    %245 = arith.mulf %243, %244 : vector<8x32xf32>
    %cst_22 = arith.constant 0.000000e+00 : f32
    %246 = vector.broadcast %cst_22 : f32 to vector<8x32xf32>
    %247 = arith.maximumf %245, %246 : vector<8x32xf32>
    %cst_23 = arith.constant dense<0.000000e+00> : vector<8x128xf32>
    %248 = tpu.matmul %247, %1, %cst_23 {dimension_numbers = #tpu.dot_dimension_numbers<[1], [0], [0], [1], [0, 0, 1, 1], [], []>} : vector<8x32xf32>, vector<32x128xf32>, vector<8x128xf32> -> vector<8x128xf32>
    %249 = vector.broadcast %3 : vector<1x128xf32> to vector<8x128xf32>
    %250 = arith.addf %248, %249 : vector<8x128xf32>
    %251 = tpu.concatenate %220, %217, %245, %242, %250 in 1 : vector<8x32xf32>, vector<8x32xf32>, vector<8x32xf32>, vector<8x32xf32>, vector<8x128xf32> -> vector<8x256xf32>
    %c0_24 = arith.constant 0 : index
    %c0_25 = arith.constant 0 : index
    %252 = vector.load %arg3[%c0_24, %c0_25] : memref<8x256xf32, #tpu.memory_space<vmem>>, vector<8x256xf32>
    tpu.vector_store %arg3[%c0_24, %c0_25], %251 {strides = array<i32>} : memref<8x256xf32, #tpu.memory_space<vmem>>, vector<8x256xf32>,
    return
  }
}

</mosaic_0001>

<bundles_post_ra>
// kernel: lstm_net_forward.1
= control target key start
LH: loop header
LB: loop body
LE: loop exit
PB: predicated region body
PF: predicated region fallthrough
CT: control target
= control target key end

     0   :  { %8 = vsyncpa [#allocation3], 0  ;;  %s1709_s12 = smov [#allocation2]   ;;  %s2165_s0 = inlined_call_operand.vmem [shape: f32[8,128], index: 0, kind: input, shape index: {}]   ;;  %s2166_s1 = inlined_call_operand.vmem [shape: f32[8,128], index: 1, kind: input, shape index: {}]   ;;  %s2167_s2 = inlined_call_operand.hbm [shape: f32[176,256], index: 2, kind: input, shape index: {}]   ;;  %s2168_s3 = inlined_call_operand.vmem [shape: f32[8,256], index: 3, kind: output, shape index: {}]  }
   0x1   :  { %s18_s13 = sshll.u32 %s1709_s12, 4  ;;  %s1685_s16 = scalar_lea.hbm %s2167_s2, 5632  ;;  %s19_s13 = int_to_ptr.vmem [resolvable:$true] %s18_s13 }
   0x2   :  { %p1686_p0 = scmp.ne.s32.totalorder %s2167_s2, %s1685_s16  ;;  %p1689_p1 = scmp.lt.u32.totalorder %s1685_s16, %s2167_s2 }
   0x4   :  { %p1691_p2 = pnand %p1689_p1, %p1686_p0 }
   0x6   :  { %1694 = shalt.err (!%p1691_p2)
}
   0x7   :  { %s1695_s21 = scalar_lea.vmem %s19_s13, 5632  ;;  %p1700_p4 = scmp.lt.s32.totalorder %s19_s13, %s19_s13 }
   0x8   :  { %p1696_p3 = scmp.ne.s32.totalorder %s19_s13, %s1695_s21  ;;  %p1701_p5 = scmp.lt.s32.totalorder %s1695_s21, %s1695_s21 }
   0xa   :  { %p1702_p6 = por %p1701_p5, %p1700_p4 }
   0xc   :  { %p1703_p7 = pnand %p1702_p6, %p1696_p3 }
   0xe   :  { %1706 = shalt.err (!%p1703_p7)
}
   0xf   :  { %s1710_s22 = smov 256   ;;  %s1711_s23 = smov 16  }
  0x10   :  { %24 = dma.hbm_to_vmem [thread:$0]  %s2167_s2, 5632, %s19_s13, [#allocation3], %s1710_s22, %s1710_s22, %s1711_s23  }
  0x11   :  { %1707 = dma.done.wait [#allocation3], 5632  }
  0x12   :  { %1708 = vsyncadd [#allocation3], 4294961664  ;;  %v1712_v0 = vmov 0.0   ;;  %v1760_v1 = vld [vmem:[%s2166_s1] sm:$0xff]  ;;  %v29_v2 = vld [vmem:[#allocation2 + $0x8] sm:$0xff]  ;;  %s1713_s1 = smov 112   ;;  %v69_v55 = vlaneseq }
  0x13   :  { %170 = vmatprep.mubr.f32.mxu0 %v1712_v0  ;;  %272 = vmatprep.mubr.f32.mxu1 %v1712_v0  ;;  %v31_v3 = vld [vmem:[#allocation2 + $0x18] sm:$0xff]  ;;  %v28_v5 = vld [vmem:[#allocation2] sm:$0xff]  ;;  %v30_v6 = vld [vmem:[#allocation2 + $0x10] sm:$0xff]  ;;  %vm100_vm0 = vcmask 130048   ;;  %vm102_vm1 = vcmask 392192   ;;  %vm104_vm2 = vcmask 654336  }
  0x14   :  { %94 = vrot.lane.b32.xlu0 %v1760_v1, %s1711_s23  ;;  %v1764_v4 = vpack.c.bf16 %v31_v3, %v29_v2  ;;  %v33_v7 = vld [vmem:[#allocation2 + $0x28] sm:$0xff]  ;;  %v1766_v8 = vpack.c.bf16 %v30_v6, %v28_v5  ;;  %v35_v9 = vld [vmem:[#allocation2 + $0x38] sm:$0xff]  ;;  %v32_v10 = vld [vmem:[#allocation2 + $0x20] sm:$0xff]  ;;  %v70_v56 = vand.u32 127, %v69_v55  ;;  %v84_v58 = vshrl.u32 %v69_v55, 7  ;;  %s1716_s29 = smov 32  }
  0x15   :  { %v34_v11 = vld [vmem:[#allocation2 + $0x30] sm:$0xff]  ;;  %v1769_v12 = vpack.c.bf16 %v35_v9, %v33_v7  ;;  %v37_v13 = vld [vmem:[#allocation2 + $0x48] sm:$0xff]  ;;  %v39_v14 = vld [vmem:[#allocation2 + $0x58] sm:$0xff]  ;;  %v1714_v63 = vmov 0.5   ;;  %s1717_s30 = smov 48   ;;  %s1718_s4 = smov 96  }
  0x16   :  { %1315 = vmatprep.subr.bf16.mxu0 %v1764_v4  ;;  %1347 = vmatprep.subr.bf16.mxu1 %v1764_v4  ;;  %v1773_v15 = vpack.c.bf16 %v34_v11, %v32_v10  ;;  %v1779_v16 = vpack.c.bf16 %v39_v14, %v37_v13  ;;  %v36_v17 = vld [vmem:[#allocation2 + $0x40] sm:$0xff]  ;;  %v38_v18 = vld [vmem:[#allocation2 + $0x50] sm:$0xff]  ;;  %v41_v19 = vld [vmem:[#allocation2 + $0x68] sm:$0xff]  ;;  %v72_v57 = vshra.s32 %v70_v56, 5  ;;  %v85_v60 = vsub.s32 0, %v84_v58  ;;  %s1719_s5 = smov 80  }
  0x17   :  { %1317 = vmatpush1.bf16.msra.mxu0 %v1766_v8  ;;  %1349 = vmatpush1.bf16.msra.mxu1 %v1766_v8  ;;  %v43_v20 = vld [vmem:[#allocation2 + $0x78] sm:$0xff]  ;;  %v1783_v21 = vpack.c.bf16 %v38_v18, %v36_v17  ;;  %v40_v23 = vld [vmem:[#allocation2 + $0x60] sm:$0xff]  ;;  %v42_v24 = vld [vmem:[#allocation2 + $0x70] sm:$0xff]  ;;  %vm1721_vm5 = vmmov 0   ;;  %vm1192_vm6 = vcmask 261120   ;;  %vm1277_vm7 = vcmask 523264  }
  0x18   :  { %97 = vrot.lane.b32.xlu0 %v1760_v1, %s1713_s1  ;;  %1319 = vmatprep.subr.bf16.mxu0 %v1769_v12  ;;  %v1787_v22 = vpack.c.bf16 %v43_v20, %v41_v19  ;;  %v45_v25 = vld [vmem:[#allocation2 + $0x88] sm:$0xff]  ;;  %v47_v26 = vld [vmem:[#allocation2 + $0x98] sm:$0xff]  ;;  %v1791_v27 = vpack.c.bf16 %v42_v24, %v40_v23  ;;  %v44_v29 = vld [vmem:[#allocation2 + $0x80] sm:$0xff]  ;;  %v74_v59 = vand.u32 3, %v72_v57  ;;  %vm1279_vm8 = vcmask 785408  }
  0x19   :  { %1351 = vmatprep.subr.bf16.mxu1 %v1769_v12  ;;  %v1795_v28 = vpack.c.bf16 %v47_v26, %v45_v25  ;;  %v46_v30 = vld [vmem:[#allocation2 + $0x90] sm:$0xff]  ;;  %v49_v31 = vld [vmem:[#allocation2 + $0xa8] sm:$0xff]  ;;  %v51_v32 = vld [vmem:[#allocation2 + $0xb8] sm:$0xff] }
  0x1a   :  { %v1799_v33 = vpack.c.bf16 %v46_v30, %v44_v29  ;;  %v1803_v34 = vpack.c.bf16 %v51_v32, %v49_v31  ;;  %v48_v35 = vld [vmem:[#allocation2 + $0xa0] sm:$0xff]  ;;  %v50_v36 = vld [vmem:[#allocation2 + $0xb0] sm:$0xff]  ;;  %v53_v37 = vld [vmem:[#allocation2 + $0xc8] sm:$0xff]  ;;  %vm76_vm3 = vcmp.eq.s32.totalorder %v74_v59, 2  ;;  %v71_v32 = vadd.s32 128, %v70_v56 }
  0x1b   :  { %1321 = vmatpush1.bf16.msra.mxu0 %v1773_v15  ;;  %1353 = vmatpush1.bf16.msra.mxu1 %v1773_v15  ;;  %v55_v38 = vld [vmem:[#allocation2 + $0xd8] sm:$0xff]  ;;  %v1807_v39 = vpack.c.bf16 %v50_v36, %v48_v35  ;;  %v52_v41 = vld [vmem:[#allocation2 + $0xc0] sm:$0xff]  ;;  %v54_v42 = vld [vmem:[#allocation2 + $0xd0] sm:$0xff]  ;;  %v1861_v2 = vsel %vm76_vm3, 1.0, %v1714_v63  ;;  %v1866_v10 = vsel %vm76_vm3, 0.0, %v1714_v63 }
  0x1c   :  { %1323 = vmatprep.subr.bf16.mxu0 %v1779_v16  ;;  %1355 = vmatprep.subr.bf16.mxu1 %v1779_v16  ;;  %v1811_v40 = vpack.c.bf16 %v55_v38, %v53_v37  ;;  %v57_v43 = vld [vmem:[#allocation2 + $0xe8] sm:$0xff]  ;;  %v59_v44 = vld [vmem:[#allocation2 + $0xf8] sm:$0xff]  ;;  %v1815_v45 = vpack.c.bf16 %v54_v42, %v52_v41  ;;  %v56_v47 = vld [vmem:[#allocation2 + $0xe0] sm:$0xff]  ;;  %v73_v35 = vshra.s32 %v71_v32, 5  ;;  %v89_v37 = vsub.s32 1, %v84_v58 }
  0x1d   :  { %v1819_v46 = vpack.c.bf16 %v59_v44, %v57_v43  ;;  %v58_v48 = vld [vmem:[#allocation2 + $0xf0] sm:$0xff]  ;;  %v1835_v51 = vld [vmem:[%s2165_s0] sm:$0xff]  ;;  %s1715_s0 = smov 64  }
  0x1e   :  { %v1823_v49 = vpack.c.bf16 %v58_v48, %v56_v47  ;;  %v65_v61 = vld [vmem:[#allocation2 + $0x140] ss:$8 sm:$0x3]  ;;  %v75_v36 = vand.u32 3, %v73_v35 }
  0x1f   :  { %1325 = vmatpush1.bf16.msra.mxu0 %v1783_v21  ;;  %1357 = vmatpush1.bf16.msra.mxu1 %v1783_v21  ;;  %v1858_v62 = vrot.slane %v65_v61, %v85_v60  ;;  %v1897_v38 = vrot.slane %v65_v61, %v89_v37 }
  0x20   :  { %1327 = vmatprep.subr.bf16.mxu0 %v1787_v22  ;;  %1359 = vmatprep.subr.bf16.mxu1 %v1787_v22  ;;  %vm77_vm4 = vcmp.eq.s32.totalorder %v75_v36, 2 }
  0x21   :  { %v1901_v43 = vsel %vm77_vm4, 1.0, %v1714_v63  ;;  %v1908_v55 = vsel %vm77_vm4, 0.0, %v1714_v63 }
  0x23   :  { %1329 = vmatpush1.bf16.msra.mxu0 %v1791_v27  ;;  %1361 = vmatpush1.bf16.msra.mxu1 %v1791_v27 }
  0x24   :  { %1331 = vmatprep.subr.bf16.mxu0 %v1795_v28  ;;  %1363 = vmatprep.subr.bf16.mxu1 %v1795_v28 }
  0x27   :  { %1333 = vmatpush1.bf16.msra.mxu0 %v1799_v33  ;;  %1365 = vmatpush1.bf16.msra.mxu1 %v1799_v33 }
  0x28   :  { %1335 = vmatprep.subr.bf16.mxu0 %v1803_v34  ;;  %1367 = vmatprep.subr.bf16.mxu1 %v1803_v34 }
  0x2b   :  { %1337 = vmatpush1.bf16.msra.mxu0 %v1807_v39  ;;  %1369 = vmatpush1.bf16.msra.mxu1 %v1807_v39 }
  0x2c   :  { %1339 = vmatprep.subr.bf16.mxu0 %v1811_v40  ;;  %1371 = vmatprep.subr.bf16.mxu1 %v1811_v40 }
  0x2f   :  { %1341 = vmatpush1.bf16.msra.mxu0 %v1815_v45  ;;  %1373 = vmatpush1.bf16.msra.mxu1 %v1815_v45 }
  0x30   :  { %1343 = vmatprep.subr.bf16.mxu0 %v1819_v46  ;;  %1375 = vmatprep.subr.bf16.mxu1 %v1819_v46 }
  0x33   :  { %1345 = vmatpush1.bf16.msra.mxu0 %v1823_v49  ;;  %1377 = vmatpush1.bf16.msra.mxu1 %v1823_v49 }
  0x34   :  { %1379 = vmatprep.subr.bf16.mxu0 %v1764_v4  ;;  %1411 = vmatprep.subr.bf16.mxu1 %v1764_v4 }
  0x86   :  { %v95_v50 = vpop.permute.xlu0 %94 }
  0x87   :  { %v101_v52 = vsel %vm100_vm0, %v1835_v51, %v95_v50 }
  0x8a   :  { %v98_v53 = vpop.permute.xlu0 %97 }
  0x8b   :  { %v103_v54 = vsel %vm102_vm1, %v101_v52, %v98_v53 }
  0x8c   :  { %1288 = vmatmul.mubr.msk.f32.vlgmr.msra.gmra.mrb[0].mxu0 %vm104_vm2, %v103_v54 }
  0x8d   :  { %1381 = vmatpush1.bf16.msra.mxu0 %v1766_v8  ;;  %402 = vmatprep.mubr.f32.mxu0 %v1712_v0 }
  0x8e   :  { %1383 = vmatprep.subr.bf16.mxu0 %v1769_v12 }
  0x91   :  { %1385 = vmatpush1.bf16.msra.mxu0 %v1773_v15 }
  0x92   :  { %1387 = vmatprep.subr.bf16.mxu0 %v1779_v16 }
  0x95   :  { %1389 = vmatpush1.bf16.msra.mxu0 %v1783_v21 }
  0x96   :  { %1391 = vmatprep.subr.bf16.mxu0 %v1787_v22 }
  0x99   :  { %1393 = vmatpush1.bf16.msra.mxu0 %v1791_v27 }
  0x9a   :  { %1395 = vmatprep.subr.bf16.mxu0 %v1795_v28 }
  0x9d   :  { %1397 = vmatpush1.bf16.msra.mxu0 %v1799_v33 }
  0x9e   :  { %1399 = vmatprep.subr.bf16.mxu0 %v1803_v34 }
  0xa1   :  { %1401 = vmatpush1.bf16.msra.mxu0 %v1807_v39 }
  0xa2   :  { %1403 = vmatprep.subr.bf16.mxu0 %v1811_v40 }
  0xa5   :  { %1405 = vmatpush1.bf16.msra.mxu0 %v1815_v45 }
  0xa6   :  { %1407 = vmatprep.subr.bf16.mxu0 %v1819_v46 }
  0xa9   :  { %1409 = vmatpush1.bf16.msra.mxu0 %v1823_v49 }
  0xaa   :  { %1443 = vmatprep.subr.bf16.mxu0 %v1764_v4 }
 0x15f   :  { %v172_v3 = vpop.f32.mrb[0].mxu0 }
 0x160   :  { %v173_v5 = vadd.f32 %v172_v3, %v1858_v62  ;;  %v174_v6 = vpop.f32.mrb[1].mxu0 }
 0x162   :  { %v176_v7 = vmul.f32 %v173_v5, %v1861_v2 }
 0x164   :  { %1621 = vtanh.f32 %v176_v7 }
 0x16e   :  { %v1622_v9 = vpop.eup %1621 }
 0x16f   :  { %v178_v11 = vmul.f32 %v1622_v9, %v1861_v2 }
 0x171   :  { %v179_v13 = vadd.f32 %v178_v11, %v1866_v10 }
 0x173   :  { %182 = vrot.lane.b32.xlu1 %v179_v13, %s1715_s0  ;;  %v180_v18 = vmul.f32 %v179_v13, %v1760_v1 }
 0x1e5   :  { %v183_v14 = vpop.permute.xlu1 %182 }
 0x1e6   :  { %v185_v17 = vmul.f32 %v183_v14, %v179_v13 }
 0x1e8   :  { %187 = vrot.lane.b32.xlu1 %v185_v17, %s1716_s29 }
 0x1ec   :  { %198 = vrot.lane.b32.xlu1 %v1835_v51, %s1713_s1 }
 0x25a   :  { %v188_v19 = vpop.permute.xlu1 %187 }
 0x25b   :  { %v190_v20 = vadd.f32 %v188_v19, %v180_v18 }
 0x25d   :  { %1623 = vtanh.f32 %v190_v20 }
 0x25e   :  { %v199_v26 = vpop.permute.xlu1 %198 }
 0x267   :  { %v1624_v23 = vpop.eup %1623 }
 0x268   :  { %193 = vrot.lane.b32.xlu0 %v1624_v23, %s1715_s0 }
 0x2da   :  { %v194_v24 = vpop.permute.xlu0 %193 }
 0x2db   :  { %v196_v25 = vmul.f32 %v194_v24, %v179_v13 }
 0x2dd   :  { %202 = vrot.lane.b32.xlu0 %v196_v25, %s1717_s30 }
 0x34f   :  { %v203_v29 = vpop.permute.xlu0 %202 }
 0x350   :  { %v205_v30 = vsel %vm100_vm0, %v199_v26, %v203_v29 }
 0x351   :  { %v206_v31 = vsel %vm102_vm1, %v205_v30, %v98_v53 }
 0x352   :  { %1289 = vmatmul.mubr.msk.f32.vlgmr.msra.gmra.mrb[0].mxu1 %vm104_vm2, %v206_v31 }
 0x353   :  { %1413 = vmatpush1.bf16.msra.mxu1 %v1766_v8  ;;  %529 = vmatprep.mubr.f32.mxu1 %v1712_v0 }
 0x354   :  { %1415 = vmatprep.subr.bf16.mxu1 %v1769_v12 }
 0x357   :  { %1417 = vmatpush1.bf16.msra.mxu1 %v1773_v15 }
 0x358   :  { %1419 = vmatprep.subr.bf16.mxu1 %v1779_v16 }
 0x35b   :  { %1421 = vmatpush1.bf16.msra.mxu1 %v1783_v21 }
 0x35c   :  { %1423 = vmatprep.subr.bf16.mxu1 %v1787_v22 }
 0x35f   :  { %1425 = vmatpush1.bf16.msra.mxu1 %v1791_v27 }
 0x360   :  { %1427 = vmatprep.subr.bf16.mxu1 %v1795_v28 }
 0x363   :  { %1429 = vmatpush1.bf16.msra.mxu1 %v1799_v33 }
 0x364   :  { %1431 = vmatprep.subr.bf16.mxu1 %v1803_v34 }
 0x367   :  { %1433 = vmatpush1.bf16.msra.mxu1 %v1807_v39 }
 0x368   :  { %1435 = vmatprep.subr.bf16.mxu1 %v1811_v40 }
 0x36b   :  { %1437 = vmatpush1.bf16.msra.mxu1 %v1815_v45 }
 0x36c   :  { %1439 = vmatprep.subr.bf16.mxu1 %v1819_v46 }
 0x36f   :  { %1441 = vmatpush1.bf16.msra.mxu1 %v1823_v49 }
 0x370   :  { %1475 = vmatprep.subr.bf16.mxu1 %v1764_v4 }
 0x425   :  { %v274_v41 = vpop.f32.mrb[0].mxu1 }
 0x426   :  { %v275_v42 = vadd.f32 %v274_v41, %v1858_v62  ;;  %v276_v44 = vpop.f32.mrb[1].mxu1 }
 0x427   :  { %v277_v47 = vadd.f32 %v276_v44, %v1897_v38 }
 0x428   :  { %v279_v48 = vmul.f32 %v275_v42, %v1861_v2 }
 0x429   :  { %v280_v50 = vmul.f32 %v277_v47, %v1901_v43 }
 0x42a   :  { %1625 = vtanh.f32 %v279_v48 }
 0x42b   :  { %1627 = vtanh.f32 %v280_v50 }
 0x434   :  { %v1626_v52 = vpop.eup %1625 }
 0x435   :  { %v1628_v53 = vpop.eup %1627  ;;  %v283_v54 = vmul.f32 %v1626_v52, %v1861_v2 }
 0x436   :  { %v284_v56 = vmul.f32 %v1628_v53, %v1901_v43 }
 0x437   :  { %v285_v57 = vadd.f32 %v283_v54, %v1866_v10 }
 0x438   :  { %v286_v58 = vadd.f32 %v284_v56, %v1908_v55 }
 0x439   :  { %289 = vrot.lane.b32.xlu1 %v285_v57, %s1715_s0  ;;  %v287_v5 = vmul.f32 %v285_v57, %v190_v20 }
 0x43a   :  { %309 = vrot.lane.b32.xlu0 %v286_v58, %s1715_s0 }
 0x43d   :  { %304 = vrot.lane.b32.xlu1 %v1760_v1, %s1715_s0 }
 0x4ab   :  { %v290_v59 = vpop.permute.xlu1 %289 }
 0x4ac   :  { %v292_v60 = vmul.f32 %v290_v59, %v285_v57  ;;  %v310_v61 = vpop.permute.xlu0 %309 }
 0x4ad   :  { %v312_v3 = vmul.f32 %v310_v61, %v286_v58 }
 0x4ae   :  { %294 = vrot.lane.b32.xlu0 %v292_v60, %s1716_s29 }
 0x4af   :  { %314 = vrot.lane.b32.xlu1 %v312_v3, %s1716_s29  ;;  %v305_v63 = vpop.permute.xlu1 %304 }
 0x4b0   :  { %v307_v6 = vmul.f32 %v305_v63, %v286_v58 }
 0x520   :  { %v295_v7 = vpop.permute.xlu0 %294 }
 0x521   :  { %v1919_v9 = vadd.f32 %v295_v7, %v287_v5  ;;  %v315_v11 = vpop.permute.xlu1 %314 }
 0x522   :  { %v1921_v13 = vadd.f32 %v315_v11, %v307_v6 }
 0x523   :  { %1629 = vtanh.f32 %v1919_v9 }
 0x524   :  { %1631 = vtanh.f32 %v1921_v13 }
 0x52d   :  { %v1630_v1 = vpop.eup %1629 }
 0x52e   :  { %v1632_v14 = vpop.eup %1631  ;;  %300 = vrot.lane.b32.xlu0 %v1630_v1, %s1715_s0 }
 0x52f   :  { %320 = vrot.lane.b32.xlu1 %v1632_v14, %s1715_s0 }
 0x532   :  { %324 = vrot.lane.b32.xlu0 %v1835_v51, %s1718_s4 }
 0x5a0   :  { %v301_v17 = vpop.permute.xlu0 %300 }
 0x5a1   :  { %v303_v18 = vmul.f32 %v301_v17, %v285_v57  ;;  %v321_v19 = vpop.permute.xlu1 %320 }
 0x5a2   :  { %v323_v20 = vmul.f32 %v321_v19, %v286_v58 }
 0x5a3   :  { %328 = vrot.lane.b32.xlu1 %v303_v18, %s1717_s30 }
 0x5a4   :  { %332 = vrot.lane.b32.xlu0 %v323_v20, %s1719_s5  ;;  %v325_v23 = vpop.permute.xlu0 %324 }
 0x615   :  { %v329_v24 = vpop.permute.xlu1 %328 }
 0x616   :  { %v335_v25 = vsel %vm100_vm0, %v325_v23, %v329_v24  ;;  %v333_v26 = vpop.permute.xlu0 %332 }
 0x617   :  { %v336_v29 = vsel %vm102_vm1, %v335_v25, %v333_v26 }
 0x618   :  { %1290 = vmatmul.mubr.msk.f32.vlgmr.msra.gmra.mrb[2].mxu0 %vm104_vm2, %v336_v29 }
 0x619   :  { %1445 = vmatpush1.bf16.msra.mxu0 %v1766_v8  ;;  %656 = vmatprep.mubr.f32.mxu0 %v1712_v0 }
 0x61a   :  { %1447 = vmatprep.subr.bf16.mxu0 %v1769_v12 }
 0x61d   :  { %1449 = vmatpush1.bf16.msra.mxu0 %v1773_v15 }
 0x61e   :  { %1451 = vmatprep.subr.bf16.mxu0 %v1779_v16 }
 0x621   :  { %1453 = vmatpush1.bf16.msra.mxu0 %v1783_v21 }
 0x622   :  { %1455 = vmatprep.subr.bf16.mxu0 %v1787_v22 }
 0x625   :  { %1457 = vmatpush1.bf16.msra.mxu0 %v1791_v27 }
 0x626   :  { %1459 = vmatprep.subr.bf16.mxu0 %v1795_v28 }
 0x629   :  { %1461 = vmatpush1.bf16.msra.mxu0 %v1799_v33 }
 0x62a   :  { %1463 = vmatprep.subr.bf16.mxu0 %v1803_v34 }
 0x62d   :  { %1465 = vmatpush1.bf16.msra.mxu0 %v1807_v39 }
 0x62e   :  { %1467 = vmatprep.subr.bf16.mxu0 %v1811_v40 }
 0x631   :  { %1469 = vmatpush1.bf16.msra.mxu0 %v1815_v45 }
 0x632   :  { %1471 = vmatprep.subr.bf16.mxu0 %v1819_v46 }
 0x635   :  { %1473 = vmatpush1.bf16.msra.mxu0 %v1823_v49 }
 0x636   :  { %1507 = vmatprep.subr.bf16.mxu0 %v1764_v4 }
 0x6eb   :  { %v404_v30 = vpop.f32.mrb[2].mxu0 }
 0x6ec   :  { %v405_v31 = vadd.f32 %v404_v30, %v1858_v62  ;;  %v406_v32 = vpop.f32.mrb[3].mxu0 }
 0x6ed   :  { %v407_v35 = vadd.f32 %v406_v32, %v1897_v38 }
 0x6ee   :  { %v409_v36 = vmul.f32 %v405_v31, %v1861_v2 }
 0x6ef   :  { %v410_v37 = vmul.f32 %v407_v35, %v1901_v43 }
 0x6f0   :  { %1633 = vtanh.f32 %v409_v36 }
 0x6f1   :  { %1635 = vtanh.f32 %v410_v37 }
 0x6fa   :  { %v1634_v41 = vpop.eup %1633 }
 0x6fb   :  { %v1636_v42 = vpop.eup %1635  ;;  %v413_v44 = vmul.f32 %v1634_v41, %v1861_v2 }
 0x6fc   :  { %v414_v47 = vmul.f32 %v1636_v42, %v1901_v43 }
 0x6fd   :  { %v415_v48 = vadd.f32 %v413_v44, %v1866_v10 }
 0x6fe   :  { %v416_v50 = vadd.f32 %v414_v47, %v1908_v55 }
 0x6ff   :  { %419 = vrot.lane.b32.xlu1 %v415_v48, %s1715_s0  ;;  %v417_v57 = vmul.f32 %v415_v48, %v1919_v9 }
 0x700   :  { %436 = vrot.lane.b32.xlu0 %v416_v50, %s1715_s0  ;;  %v434_v59 = vmul.f32 %v416_v50, %v1921_v13 }
 0x771   :  { %v420_v52 = vpop.permute.xlu1 %419 }
 0x772   :  { %v422_v53 = vmul.f32 %v420_v52, %v415_v48  ;;  %v437_v54 = vpop.permute.xlu0 %436 }
 0x773   :  { %v439_v56 = vmul.f32 %v437_v54, %v416_v50 }
 0x774   :  { %424 = vrot.lane.b32.xlu1 %v422_v53, %s1716_s29 }
 0x775   :  { %441 = vrot.lane.b32.xlu0 %v439_v56, %s1716_s29 }
 0x7e6   :  { %v425_v58 = vpop.permute.xlu1 %424 }
 0x7e7   :  { %v427_v60 = vadd.f32 %v425_v58, %v417_v57  ;;  %v442_v61 = vpop.permute.xlu0 %441 }
 0x7e8   :  { %v444_v3 = vadd.f32 %v442_v61, %v434_v59 }
 0x7e9   :  { %1637 = vtanh.f32 %v427_v60 }
 0x7ea   :  { %1639 = vtanh.f32 %v444_v3 }
 0x7f3   :  { %v1638_v63 = vpop.eup %1637 }
 0x7f4   :  { %v1640_v5 = vpop.eup %1639  ;;  %430 = vrot.lane.b32.xlu1 %v1638_v63, %s1715_s0 }
 0x7f5   :  { %447 = vrot.lane.b32.xlu0 %v1640_v5, %s1715_s0 }
 0x7f8   :  { %451 = vrot.lane.b32.xlu1 %v1835_v51, %s1719_s5 }
 0x866   :  { %v431_v6 = vpop.permute.xlu1 %430 }
 0x867   :  { %v433_v7 = vmul.f32 %v431_v6, %v415_v48  ;;  %v448_v9 = vpop.permute.xlu0 %447 }
 0x868   :  { %v450_v11 = vmul.f32 %v448_v9, %v416_v50 }
 0x869   :  { %455 = vrot.lane.b32.xlu0 %v433_v7, %s1717_s30 }
 0x86a   :  { %459 = vrot.lane.b32.xlu1 %v450_v11, %s1719_s5  ;;  %v452_v13 = vpop.permute.xlu1 %451 }
 0x8db   :  { %v456_v1 = vpop.permute.xlu0 %455 }
 0x8dc   :  { %v462_v14 = vsel %vm100_vm0, %v452_v13, %v456_v1  ;;  %v460_v17 = vpop.permute.xlu1 %459 }
 0x8dd   :  { %v463_v18 = vsel %vm102_vm1, %v462_v14, %v460_v17 }
 0x8de   :  { %1291 = vmatmul.mubr.msk.f32.vlgmr.msra.gmra.mrb[2].mxu1 %vm104_vm2, %v463_v18 }
 0x8df   :  { %1477 = vmatpush1.bf16.msra.mxu1 %v1766_v8  ;;  %783 = vmatprep.mubr.f32.mxu1 %v1712_v0 }
 0x8e0   :  { %1479 = vmatprep.subr.bf16.mxu1 %v1769_v12 }
 0x8e3   :  { %1481 = vmatpush1.bf16.msra.mxu1 %v1773_v15 }
 0x8e4   :  { %1483 = vmatprep.subr.bf16.mxu1 %v1779_v16 }
 0x8e7   :  { %1485 = vmatpush1.bf16.msra.mxu1 %v1783_v21 }
 0x8e8   :  { %1487 = vmatprep.subr.bf16.mxu1 %v1787_v22 }
 0x8eb   :  { %1489 = vmatpush1.bf16.msra.mxu1 %v1791_v27 }
 0x8ec   :  { %1491 = vmatprep.subr.bf16.mxu1 %v1795_v28 }
 0x8ef   :  { %1493 = vmatpush1.bf16.msra.mxu1 %v1799_v33 }
 0x8f0   :  { %1495 = vmatprep.subr.bf16.mxu1 %v1803_v34 }
 0x8f3   :  { %1497 = vmatpush1.bf16.msra.mxu1 %v1807_v39 }
 0x8f4   :  { %1499 = vmatprep.subr.bf16.mxu1 %v1811_v40 }
 0x8f7   :  { %1501 = vmatpush1.bf16.msra.mxu1 %v1815_v45 }
 0x8f8   :  { %1503 = vmatprep.subr.bf16.mxu1 %v1819_v46 }
 0x8fb   :  { %1505 = vmatpush1.bf16.msra.mxu1 %v1823_v49 }
 0x8fc   :  { %1539 = vmatprep.subr.bf16.mxu1 %v1764_v4 }
 0x9b1   :  { %v531_v19 = vpop.f32.mrb[2].mxu1 }
 0x9b2   :  { %v532_v20 = vadd.f32 %v531_v19, %v1858_v62  ;;  %v533_v23 = vpop.f32.mrb[3].mxu1 }
 0x9b3   :  { %v534_v24 = vadd.f32 %v533_v23, %v1897_v38 }
 0x9b4   :  { %v536_v25 = vmul.f32 %v532_v20, %v1861_v2 }
 0x9b5   :  { %v537_v26 = vmul.f32 %v534_v24, %v1901_v43 }
 0x9b6   :  { %1641 = vtanh.f32 %v536_v25 }
 0x9b7   :  { %1643 = vtanh.f32 %v537_v26 }
 0x9c0   :  { %v1642_v29 = vpop.eup %1641 }
 0x9c1   :  { %v1644_v30 = vpop.eup %1643  ;;  %v540_v31 = vmul.f32 %v1642_v29, %v1861_v2 }
 0x9c2   :  { %v541_v32 = vmul.f32 %v1644_v30, %v1901_v43 }
 0x9c3   :  { %v542_v35 = vadd.f32 %v540_v31, %v1866_v10 }
 0x9c4   :  { %v543_v36 = vadd.f32 %v541_v32, %v1908_v55 }
 0x9c5   :  { %546 = vrot.lane.b32.xlu0 %v542_v35, %s1715_s0  ;;  %v544_v47 = vmul.f32 %v542_v35, %v427_v60 }
 0x9c6   :  { %563 = vrot.lane.b32.xlu1 %v543_v36, %s1715_s0  ;;  %v561_v50 = vmul.f32 %v543_v36, %v444_v3 }
 0xa37   :  { %v547_v37 = vpop.permute.xlu0 %546 }
 0xa38   :  { %v549_v41 = vmul.f32 %v547_v37, %v542_v35  ;;  %v564_v42 = vpop.permute.xlu1 %563 }
 0xa39   :  { %v566_v44 = vmul.f32 %v564_v42, %v543_v36 }
 0xa3a   :  { %551 = vrot.lane.b32.xlu0 %v549_v41, %s1716_s29 }
 0xa3b   :  { %568 = vrot.lane.b32.xlu1 %v566_v44, %s1716_s29 }
 0xaac   :  { %v552_v48 = vpop.permute.xlu0 %551 }
 0xaad   :  { %v554_v52 = vadd.f32 %v552_v48, %v544_v47  ;;  %v569_v53 = vpop.permute.xlu1 %568 }
 0xaae   :  { %v571_v54 = vadd.f32 %v569_v53, %v561_v50 }
 0xaaf   :  { %1645 = vtanh.f32 %v554_v52 }
 0xab0   :  { %1647 = vtanh.f32 %v571_v54 }
 0xab9   :  { %v1646_v56 = vpop.eup %1645 }
 0xaba   :  { %v1648_v57 = vpop.eup %1647  ;;  %557 = vrot.lane.b32.xlu0 %v1646_v56, %s1715_s0 }
 0xabb   :  { %574 = vrot.lane.b32.xlu1 %v1648_v57, %s1715_s0 }
 0xabe   :  { %578 = vrot.lane.b32.xlu0 %v1835_v51, %s1715_s0 }
 0xb2c   :  { %v558_v58 = vpop.permute.xlu0 %557 }
 0xb2d   :  { %v560_v59 = vmul.f32 %v558_v58, %v542_v35  ;;  %v575_v61 = vpop.permute.xlu1 %574 }
 0xb2e   :  { %v577_v60 = vmul.f32 %v575_v61, %v543_v36 }
 0xb2f   :  { %582 = vrot.lane.b32.xlu1 %v560_v59, %s1717_s30 }
 0xb30   :  { %586 = vrot.lane.b32.xlu0 %v577_v60, %s1719_s5  ;;  %v579_v3 = vpop.permute.xlu0 %578 }
 0xba1   :  { %v583_v63 = vpop.permute.xlu1 %582 }
 0xba2   :  { %v589_v5 = vsel %vm100_vm0, %v579_v3, %v583_v63  ;;  %v587_v6 = vpop.permute.xlu0 %586 }
 0xba3   :  { %v590_v7 = vsel %vm102_vm1, %v589_v5, %v587_v6 }
 0xba4   :  { %1292 = vmatmul.mubr.msk.f32.vlgmr.msra.gmra.mrb[4].mxu0 %vm104_vm2, %v590_v7 }
 0xba5   :  { %1509 = vmatpush1.bf16.msra.mxu0 %v1766_v8  ;;  %910 = vmatprep.mubr.f32.mxu0 %v1712_v0 }
 0xba6   :  { %1511 = vmatprep.subr.bf16.mxu0 %v1769_v12 }
 0xba9   :  { %1513 = vmatpush1.bf16.msra.mxu0 %v1773_v15 }
 0xbaa   :  { %1515 = vmatprep.subr.bf16.mxu0 %v1779_v16 }
 0xbad   :  { %1517 = vmatpush1.bf16.msra.mxu0 %v1783_v21 }
 0xbae   :  { %1519 = vmatprep.subr.bf16.mxu0 %v1787_v22 }
 0xbb1   :  { %1521 = vmatpush1.bf16.msra.mxu0 %v1791_v27 }
 0xbb2   :  { %1523 = vmatprep.subr.bf16.mxu0 %v1795_v28 }
 0xbb5   :  { %1525 = vmatpush1.bf16.msra.mxu0 %v1799_v33 }
 0xbb6   :  { %1527 = vmatprep.subr.bf16.mxu0 %v1803_v34 }
 0xbb9   :  { %1529 = vmatpush1.bf16.msra.mxu0 %v1807_v39 }
 0xbba   :  { %1531 = vmatprep.subr.bf16.mxu0 %v1811_v40 }
 0xbbd   :  { %1533 = vmatpush1.bf16.msra.mxu0 %v1815_v45 }
 0xbbe   :  { %1535 = vmatprep.subr.bf16.mxu0 %v1819_v46 }
 0xbc1   :  { %1537 = vmatpush1.bf16.msra.mxu0 %v1823_v49 }
 0xbc2   :  { %1571 = vmatprep.subr.bf16.mxu0 %v1764_v4 }
 0xc77   :  { %v658_v9 = vpop.f32.mrb[4].mxu0 }
 0xc78   :  { %v659_v11 = vadd.f32 %v658_v9, %v1858_v62  ;;  %v660_v13 = vpop.f32.mrb[5].mxu0 }
 0xc79   :  { %v661_v1 = vadd.f32 %v660_v13, %v1897_v38 }
 0xc7a   :  { %v663_v14 = vmul.f32 %v659_v11, %v1861_v2 }
 0xc7b   :  { %v664_v17 = vmul.f32 %v661_v1, %v1901_v43 }
 0xc7c   :  { %1649 = vtanh.f32 %v663_v14 }
 0xc7d   :  { %1651 = vtanh.f32 %v664_v17 }
 0xc86   :  { %v1650_v18 = vpop.eup %1649 }
 0xc87   :  { %v1652_v19 = vpop.eup %1651  ;;  %v667_v20 = vmul.f32 %v1650_v18, %v1861_v2 }
 0xc88   :  { %v668_v23 = vmul.f32 %v1652_v19, %v1901_v43 }
 0xc89   :  { %v669_v4 = vadd.f32 %v667_v20, %v1866_v10 }
 0xc8a   :  { %v670_v24 = vadd.f32 %v668_v23, %v1908_v55 }
 0xc8b   :  { %673 = vrot.lane.b32.xlu1 %v669_v4, %s1715_s0  ;;  %v671_v31 = vmul.f32 %v669_v4, %v554_v52 }
 0xc8c   :  { %690 = vrot.lane.b32.xlu0 %v670_v24, %s1715_s0  ;;  %v688_v35 = vmul.f32 %v670_v24, %v571_v54 }
 0xcfd   :  { %v674_v25 = vpop.permute.xlu1 %673 }
 0xcfe   :  { %v676_v26 = vmul.f32 %v674_v25, %v669_v4  ;;  %v691_v29 = vpop.permute.xlu0 %690 }
 0xcff   :  { %v693_v30 = vmul.f32 %v691_v29, %v670_v24 }
 0xd00   :  { %678 = vrot.lane.b32.xlu1 %v676_v26, %s1716_s29 }
 0xd01   :  { %695 = vrot.lane.b32.xlu0 %v693_v30, %s1716_s29 }
 0xd72   :  { %v679_v32 = vpop.permute.xlu1 %678 }
 0xd73   :  { %v681_v36 = vadd.f32 %v679_v32, %v671_v31  ;;  %v696_v37 = vpop.permute.xlu0 %695 }
 0xd74   :  { %v698_v41 = vadd.f32 %v696_v37, %v688_v35 }
 0xd75   :  { %1653 = vtanh.f32 %v681_v36 }
 0xd76   :  { %1655 = vtanh.f32 %v698_v41 }
 0xd7f   :  { %v1654_v42 = vpop.eup %1653 }
 0xd80   :  { %v1656_v44 = vpop.eup %1655  ;;  %684 = vrot.lane.b32.xlu1 %v1654_v42, %s1715_s0 }
 0xd81   :  { %701 = vrot.lane.b32.xlu0 %v1656_v44, %s1715_s0 }
 0xd84   :  { %705 = vrot.lane.b32.xlu1 %v1835_v51, %s1717_s30 }
 0xdf2   :  { %v685_v47 = vpop.permute.xlu1 %684 }
 0xdf3   :  { %v687_v48 = vmul.f32 %v685_v47, %v669_v4  ;;  %v702_v50 = vpop.permute.xlu0 %701 }
 0xdf4   :  { %v704_v52 = vmul.f32 %v702_v50, %v670_v24 }
 0xdf5   :  { %709 = vrot.lane.b32.xlu0 %v687_v48, %s1717_s30 }
 0xdf6   :  { %713 = vrot.lane.b32.xlu1 %v704_v52, %s1719_s5  ;;  %v706_v53 = vpop.permute.xlu1 %705 }
 0xe67   :  { %v710_v54 = vpop.permute.xlu0 %709 }
 0xe68   :  { %v716_v56 = vsel %vm100_vm0, %v706_v53, %v710_v54  ;;  %v714_v57 = vpop.permute.xlu1 %713 }
 0xe69   :  { %v717_v58 = vsel %vm102_vm1, %v716_v56, %v714_v57 }
 0xe6a   :  { %1293 = vmatmul.mubr.msk.f32.vlgmr.msra.gmra.mrb[4].mxu1 %vm104_vm2, %v717_v58 }
 0xe6b   :  { %1541 = vmatpush1.bf16.msra.mxu1 %v1766_v8  ;;  %1037 = vmatprep.mubr.f32.mxu1 %v1712_v0 }
 0xe6c   :  { %1543 = vmatprep.subr.bf16.mxu1 %v1769_v12 }
 0xe6f   :  { %1545 = vmatpush1.bf16.msra.mxu1 %v1773_v15 }
 0xe70   :  { %1547 = vmatprep.subr.bf16.mxu1 %v1779_v16 }
 0xe73   :  { %1549 = vmatpush1.bf16.msra.mxu1 %v1783_v21 }
 0xe74   :  { %1551 = vmatprep.subr.bf16.mxu1 %v1787_v22 }
 0xe77   :  { %1553 = vmatpush1.bf16.msra.mxu1 %v1791_v27 }
 0xe78   :  { %1555 = vmatprep.subr.bf16.mxu1 %v1795_v28 }
 0xe7b   :  { %1557 = vmatpush1.bf16.msra.mxu1 %v1799_v33 }
 0xe7c   :  { %1559 = vmatprep.subr.bf16.mxu1 %v1803_v34 }
 0xe7f   :  { %1561 = vmatpush1.bf16.msra.mxu1 %v1807_v39 }
 0xe80   :  { %1563 = vmatprep.subr.bf16.mxu1 %v1811_v40 }
 0xe83   :  { %1565 = vmatpush1.bf16.msra.mxu1 %v1815_v45 }
 0xe84   :  { %1567 = vmatprep.subr.bf16.mxu1 %v1819_v46 }
 0xe87   :  { %1569 = vmatpush1.bf16.msra.mxu1 %v1823_v49 }
 0xf3d   :  { %v785_v59 = vpop.f32.mrb[4].mxu1 }
 0xf3e   :  { %v786_v61 = vadd.f32 %v785_v59, %v1858_v62  ;;  %v787_v60 = vpop.f32.mrb[5].mxu1 }
 0xf3f   :  { %v788_v3 = vadd.f32 %v787_v60, %v1897_v38 }
 0xf40   :  { %v790_v63 = vmul.f32 %v786_v61, %v1861_v2 }
 0xf41   :  { %v791_v5 = vmul.f32 %v788_v3, %v1901_v43 }
 0xf42   :  { %1657 = vtanh.f32 %v790_v63 }
 0xf43   :  { %1659 = vtanh.f32 %v791_v5 }
 0xf4c   :  { %v1658_v6 = vpop.eup %1657 }
 0xf4d   :  { %v1660_v7 = vpop.eup %1659  ;;  %v794_v9 = vmul.f32 %v1658_v6, %v1861_v2 }
 0xf4e   :  { %v795_v11 = vmul.f32 %v1660_v7, %v1901_v43 }
 0xf4f   :  { %v796_v13 = vadd.f32 %v794_v9, %v1866_v10 }
 0xf50   :  { %v797_v1 = vadd.f32 %v795_v11, %v1908_v55 }
 0xf51   :  { %800 = vrot.lane.b32.xlu0 %v796_v13, %s1715_s0  ;;  %v798_v20 = vmul.f32 %v796_v13, %v681_v36 }
 0xf52   :  { %817 = vrot.lane.b32.xlu1 %v797_v1, %s1715_s0  ;;  %v815_v4 = vmul.f32 %v797_v1, %v698_v41 }
 0xfc3   :  { %v801_v14 = vpop.permute.xlu0 %800 }
 0xfc4   :  { %v803_v17 = vmul.f32 %v801_v14, %v796_v13  ;;  %v818_v18 = vpop.permute.xlu1 %817 }
 0xfc5   :  { %v820_v19 = vmul.f32 %v818_v18, %v797_v1 }
 0xfc6   :  { %805 = vrot.lane.b32.xlu0 %v803_v17, %s1716_s29 }
 0xfc7   :  { %822 = vrot.lane.b32.xlu1 %v820_v19, %s1716_s29 }
0x1038   :  { %v806_v23 = vpop.permute.xlu0 %805 }
0x1039   :  { %v808_v24 = vadd.f32 %v806_v23, %v798_v20  ;;  %v823_v25 = vpop.permute.xlu1 %822 }
0x103a   :  { %v825_v26 = vadd.f32 %v823_v25, %v815_v4 }
0x103b   :  { %1661 = vtanh.f32 %v808_v24 }
0x103c   :  { %1663 = vtanh.f32 %v825_v26 }
0x1045   :  { %v1662_v29 = vpop.eup %1661 }
0x1046   :  { %v1664_v30 = vpop.eup %1663  ;;  %811 = vrot.lane.b32.xlu0 %v1662_v29, %s1715_s0 }
0x1047   :  { %828 = vrot.lane.b32.xlu1 %v1664_v30, %s1715_s0 }
0x104a   :  { %832 = vrot.lane.b32.xlu0 %v1835_v51, %s1716_s29 }
0x10b8   :  { %v812_v31 = vpop.permute.xlu0 %811 }
0x10b9   :  { %v814_v32 = vmul.f32 %v812_v31, %v796_v13  ;;  %v829_v35 = vpop.permute.xlu1 %828 }
0x10ba   :  { %v831_v36 = vmul.f32 %v829_v35, %v797_v1 }
0x10bb   :  { %836 = vrot.lane.b32.xlu1 %v814_v32, %s1717_s30 }
0x10bc   :  { %840 = vrot.lane.b32.xlu0 %v831_v36, %s1719_s5  ;;  %v833_v37 = vpop.permute.xlu0 %832 }
0x112d   :  { %v837_v41 = vpop.permute.xlu1 %836 }
0x112e   :  { %v843_v42 = vsel %vm100_vm0, %v833_v37, %v837_v41  ;;  %v841_v44 = vpop.permute.xlu0 %840 }
0x112f   :  { %v844_v47 = vsel %vm102_vm1, %v843_v42, %v841_v44 }
0x1130   :  { %1294 = vmatmul.mubr.msk.f32.vlgmr.msra.gmra.mrb[6].mxu0 %vm104_vm2, %v844_v47 }
0x1131   :  { %1573 = vmatpush1.bf16.msra.mxu0 %v1766_v8  ;;  %1161 = vmatprep.mubr.f32.mxu0 %v1712_v0 }
0x1132   :  { %1575 = vmatprep.subr.bf16.mxu0 %v1769_v12 }
0x1135   :  { %1577 = vmatpush1.bf16.msra.mxu0 %v1773_v15 }
0x1136   :  { %1579 = vmatprep.subr.bf16.mxu0 %v1779_v16 }
0x1139   :  { %1581 = vmatpush1.bf16.msra.mxu0 %v1783_v21 }
0x113a   :  { %1583 = vmatprep.subr.bf16.mxu0 %v1787_v22 }
0x113d   :  { %1585 = vmatpush1.bf16.msra.mxu0 %v1791_v27 }
0x113e   :  { %1587 = vmatprep.subr.bf16.mxu0 %v1795_v28 }
0x1141   :  { %1589 = vmatpush1.bf16.msra.mxu0 %v1799_v33 }
0x1142   :  { %1591 = vmatprep.subr.bf16.mxu0 %v1803_v34 }
0x1145   :  { %1593 = vmatpush1.bf16.msra.mxu0 %v1807_v39 }
0x1146   :  { %1595 = vmatprep.subr.bf16.mxu0 %v1811_v40 }
0x1149   :  { %1597 = vmatpush1.bf16.msra.mxu0 %v1815_v45 }
0x114a   :  { %1599 = vmatprep.subr.bf16.mxu0 %v1819_v46 }
0x114d   :  { %1601 = vmatpush1.bf16.msra.mxu0 %v1823_v49 }
0x1203   :  { %v912_v8 = vpop.f32.mrb[6].mxu0 }
0x1204   :  { %v913_v12 = vadd.f32 %v912_v8, %v1858_v62  ;;  %v914_v15 = vpop.f32.mrb[7].mxu0 }
0x1205   :  { %v915_v16 = vadd.f32 %v914_v15, %v1897_v38 }
0x1206   :  { %v917_v21 = vmul.f32 %v913_v12, %v1861_v2 }
0x1207   :  { %v918_v22 = vmul.f32 %v915_v16, %v1901_v43 }
0x1208   :  { %1665 = vtanh.f32 %v917_v21 }
0x1209   :  { %1667 = vtanh.f32 %v918_v22 }
0x1212   :  { %v1666_v27 = vpop.eup %1665 }
0x1213   :  { %v1668_v28 = vpop.eup %1667  ;;  %v921_v33 = vmul.f32 %v1666_v27, %v1861_v2 }
0x1214   :  { %v922_v34 = vmul.f32 %v1668_v28, %v1901_v43 }
0x1215   :  { %v923_v39 = vadd.f32 %v921_v33, %v1866_v10 }
0x1216   :  { %v924_v40 = vadd.f32 %v922_v34, %v1908_v55 }
0x1217   :  { %927 = vrot.lane.b32.xlu1 %v923_v39, %s1715_s0  ;;  %v925_v50 = vmul.f32 %v923_v39, %v808_v24 }
0x1218   :  { %944 = vrot.lane.b32.xlu0 %v924_v40, %s1715_s0  ;;  %v942_v53 = vmul.f32 %v924_v40, %v825_v26 }
0x1289   :  { %v928_v45 = vpop.permute.xlu1 %927 }
0x128a   :  { %v930_v46 = vmul.f32 %v928_v45, %v923_v39  ;;  %v945_v49 = vpop.permute.xlu0 %944 }
0x128b   :  { %v947_v48 = vmul.f32 %v945_v49, %v924_v40 }
0x128c   :  { %932 = vrot.lane.b32.xlu1 %v930_v46, %s1716_s29 }
0x128d   :  { %949 = vrot.lane.b32.xlu0 %v947_v48, %s1716_s29 }
0x12fe   :  { %v933_v52 = vpop.permute.xlu1 %932 }
0x12ff   :  { %v935_v54 = vadd.f32 %v933_v52, %v925_v50  ;;  %v950_v56 = vpop.permute.xlu0 %949  ;;  %v60_v52 = vld [vmem:[#allocation2 + $0x100] sm:$0xff] }
0x1300   :  { %v952_v57 = vadd.f32 %v950_v56, %v942_v53  ;;  %v62_v53 = vld [vmem:[#allocation2 + $0x120] sm:$0xff] }
0x1301   :  { %1669 = vtanh.f32 %v935_v54 }
0x1302   :  { %1671 = vtanh.f32 %v952_v57 }
0x130b   :  { %v1670_v58 = vpop.eup %1669 }
0x130c   :  { %v1672_v59 = vpop.eup %1671  ;;  %938 = vrot.lane.b32.xlu1 %v1670_v58, %s1715_s0 }
0x130d   :  { %955 = vrot.lane.b32.xlu0 %v1672_v59, %s1715_s0 }
0x1310   :  { %959 = vrot.lane.b32.xlu1 %v1835_v51, %s1711_s23 }
0x137e   :  { %v939_v61 = vpop.permute.xlu1 %938 }
0x137f   :  { %v941_v60 = vmul.f32 %v939_v61, %v923_v39  ;;  %v956_v3 = vpop.permute.xlu0 %955 }
0x1380   :  { %v958_v63 = vmul.f32 %v956_v3, %v924_v40 }
0x1381   :  { %963 = vrot.lane.b32.xlu0 %v941_v60, %s1717_s30 }
0x1382   :  { %967 = vrot.lane.b32.xlu1 %v958_v63, %s1719_s5  ;;  %v960_v5 = vpop.permute.xlu1 %959 }
0x13f3   :  { %v964_v6 = vpop.permute.xlu0 %963 }
0x13f4   :  { %v970_v7 = vsel %vm100_vm0, %v960_v5, %v964_v6  ;;  %v968_v9 = vpop.permute.xlu1 %967 }
0x13f5   :  { %v971_v11 = vsel %vm102_vm1, %v970_v7, %v968_v9  ;;  %v66_v9 = vld [vmem:[#allocation2 + $0x150] ss:$0 sm:$0xff] }
0x13f6   :  { %1295 = vmatmul.mubr.msk.f32.vlgmr.msra.gmra.mrb[6].mxu1 %vm104_vm2, %v971_v11 }
0x13f7   :  { %1311 = vmatprep.mubr.msk.f32.mxu1 %vm1721_vm5, %v1712_v0 }
0x14c9   :  { %v1039_v13 = vpop.f32.mrb[6].mxu1 }
0x14ca   :  { %v1040_v51 = vadd.f32 %v1039_v13, %v1858_v62  ;;  %v1041_v1 = vpop.f32.mrb[7].mxu1 }
0x14cb   :  { %v1042_v14 = vadd.f32 %v1041_v1, %v1897_v38 }
0x14cc   :  { %v1044_v17 = vmul.f32 %v1040_v51, %v1861_v2 }
0x14cd   :  { %v1045_v18 = vmul.f32 %v1042_v14, %v1901_v43 }
0x14ce   :  { %1673 = vtanh.f32 %v1044_v17 }
0x14cf   :  { %1675 = vtanh.f32 %v1045_v18 }
0x14d8   :  { %v1674_v19 = vpop.eup %1673 }
0x14d9   :  { %v1676_v20 = vpop.eup %1675  ;;  %v1048_v23 = vmul.f32 %v1674_v19, %v1861_v2 }
0x14da   :  { %v1049_v4 = vmul.f32 %v1676_v20, %v1901_v43 }
0x14db   :  { %v1050_v24 = vadd.f32 %v1048_v23, %v1866_v10 }
0x14dc   :  { %v1051_v25 = vadd.f32 %v1049_v4, %v1908_v55 }
0x14dd   :  { %1054 = vrot.lane.b32.xlu0 %v1050_v24, %s1715_s0  ;;  %v1052_v31 = vmul.f32 %v1050_v24, %v935_v54  ;;  %v1720_v54 = vmov 0.0|0.0  }
0x14de   :  { %1071 = vrot.lane.b32.xlu1 %v1051_v25, %s1715_s0  ;;  %v1069_v32 = vmul.f32 %v1051_v25, %v952_v57  ;;  %1602 = vmatprep.subr.bf16.mxu1 %v1720_v54  ;;  %v63_v57 = vld [vmem:[#allocation2 + $0x130] sm:$0xff] }
0x154f   :  { %v1055_v62 = vpop.permute.xlu0 %1054 }
0x1550   :  { %v1057_v26 = vmul.f32 %v1055_v62, %v1050_v24  ;;  %v1072_v29 = vpop.permute.xlu1 %1071 }
0x1551   :  { %v1074_v30 = vmul.f32 %v1072_v29, %v1051_v25 }
0x1552   :  { %1059 = vrot.lane.b32.xlu0 %v1057_v26, %s1716_s29 }
0x1553   :  { %1076 = vrot.lane.b32.xlu1 %v1074_v30, %s1716_s29 }
0x15c4   :  { %v1060_v2 = vpop.permute.xlu0 %1059 }
0x15c5   :  { %v2136_v35 = vadd.f32 %v1060_v2, %v1052_v31  ;;  %v1077_v10 = vpop.permute.xlu1 %1076 }
0x15c6   :  { %v1079_v36 = vadd.f32 %v1077_v10, %v1069_v32 }
0x15c7   :  { %1677 = vtanh.f32 %v2136_v35 }
0x15c8   :  { %1679 = vtanh.f32 %v1079_v36 }
0x15d1   :  { %v1678_v37 = vpop.eup %1677 }
0x15d2   :  { %v1680_v41 = vpop.eup %1679  ;;  %1065 = vrot.lane.b32.xlu0 %v1678_v37, %s1715_s0 }
0x15d3   :  { %1082 = vrot.lane.b32.xlu1 %v1680_v41, %s1715_s0 }
0x1644   :  { %v1066_v42 = vpop.permute.xlu0 %1065 }
0x1645   :  { %v1068_v44 = vmul.f32 %v1066_v42, %v1050_v24  ;;  %v1083_v47 = vpop.permute.xlu1 %1082 }
0x1646   :  { %v1085_v8 = vmul.f32 %v1083_v47, %v1051_v25 }
0x1647   :  { %1087 = vrot.lane.b32.xlu0 %v1068_v44, %s1717_s30 }
0x1648   :  { %1091 = vrot.lane.b32.xlu1 %v1085_v8, %s1719_s5 }
0x16b9   :  { %v1088_v12 = vpop.permute.xlu0 %1087 }
0x16ba   :  { %v1094_v15 = vsel %vm100_vm0, 0.0, %v1088_v12  ;;  %v1092_v16 = vpop.permute.xlu1 %1091 }
0x16bb   :  { %v1095_v21 = vsel %vm102_vm1, %v1094_v15, %v1092_v16 }
0x16bc   :  { %1296 = vmatmul.mubr.msk.f32.vlgmr.msra.gmra.mrb[8].mxu0 %vm104_vm2, %v1095_v21 }
0x178f   :  { %v1163_v22 = vpop.f32.mrb[8].mxu0 }
0x1790   :  { %v1164_v27 = vpop.f32.mrb[9].mxu0 }
0x1791   :  { %v1165_v28 = vadd.f32 %v1164_v27, %v1897_v38  ;;  %v61_v38 = vld [vmem:[#allocation2 + $0x110] sm:$0xff] }
0x1792   :  { %v1603_v56 = vpack.c.bf16 %v61_v38, %v60_v52 }
0x1793   :  { %v1167_v33 = vmul.f32 %v1165_v28, %v1901_v43 }
0x1794   :  { %1604 = vmatpush3.bf16.msra.mxu1 %v1603_v56 }
0x1795   :  { %1681 = vtanh.f32 %v1167_v33  ;;  %1605 = vmatprep.subr.bf16.mxu1 %v1720_v54 }
0x179f   :  { %v1682_v34 = vpop.eup %1681 }
0x17a0   :  { %v1169_v39 = vmul.f32 %v1682_v34, %v1901_v43  ;;  %v1606_v43 = vpack.c.bf16 %v63_v57, %v62_v53 }
0x17a2   :  { %v1170_v40 = vadd.f32 %v1169_v39, %v1908_v55  ;;  %1607 = vmatpush3.bf16.msra.mxu1 %v1606_v43 }
0x17a4   :  { %1173 = vrot.lane.b32.xlu0 %v1170_v40, %s1715_s0  ;;  %v1171_v49 = vmul.f32 %v1170_v40, %v1079_v36 }
0x1816   :  { %v1174_v45 = vpop.permute.xlu0 %1173 }
0x1817   :  { %v1176_v46 = vmul.f32 %v1174_v45, %v1170_v40 }
0x1819   :  { %1178 = vrot.lane.b32.xlu1 %v1176_v46, %s1716_s29 }
0x188b   :  { %v1179_v48 = vpop.permute.xlu1 %1178 }
0x188c   :  { %v1181_v50 = vadd.f32 %v1179_v48, %v1171_v49 }
0x188e   :  { %1683 = vtanh.f32 %v1181_v50 }
0x1898   :  { %v1684_v55 = vpop.eup %1683 }
0x1899   :  { %1184 = vrot.lane.b32.xlu0 %v1684_v55, %s1715_s0 }
0x189d   :  { %1265 = vrot.lane.b32.xlu0 %v1068_v44, %s1716_s29 }
0x18a1   :  { %1273 = vrot.lane.b32.xlu0 %v1181_v50, %s1715_s0 }
0x190b   :  { %v1185_v58 = vpop.permute.xlu0 %1184 }
0x190c   :  { %v1187_v59 = vmul.f32 %v1185_v58, %v1170_v40 }
0x190e   :  { %v1188_v61 = vmax.f32 %v1187_v59, 0.0 }
0x190f   :  { %v1266_v60 = vpop.permute.xlu0 %1265 }
0x1910   :  { %1190 = vrot.lane.b32.xlu1 %v1188_v61, %s1716_s29  ;;  %v1276_v3 = vsel %vm1192_vm6, %v1266_v60, %v2136_v35 }
0x1913   :  { %v1274_v5 = vpop.permute.xlu0 %1273 }
0x1914   :  { %1269 = vrot.lane.b32.xlu1 %v1187_v59, %s1718_s4 }
0x1982   :  { %v1191_v0 = vpop.permute.xlu1 %1190 }
0x1983   :  { %1312 = vmatmul.mubr.msk.f32.vlgmr.msra.gmra.mrb[8].mxu1 %vm1192_vm6, %v1191_v0 }
0x1986   :  { %v1270_v63 = vpop.permute.xlu1 %1269 }
0x1987   :  { %v1278_v6 = vsel %vm1277_vm7, %v1276_v3, %v1270_v63 }
0x1988   :  { %v1280_v7 = vsel %vm1279_vm8, %v1278_v6, %v1274_v5 }
0x1989   :  { %1281 = vst [vmem:[%s2168_s3] sm:$0xff] %v1280_v7 }
0x1a56   :  { %v1261_v11 = vpop.f32.mrb[8].mxu1 }
0x1a57   :  { %v1262_v13 = vadd.f32 %v1261_v11, %v66_v9  ;;  %v1313_v51 = vpop.f32.mrb[9].mxu1 }
0x1a59   :  { %1282 = vst [vmem:[%s2168_s3 + $0x8] sm:$0xff] %v1262_v13 }
0x1a5a   :  { %1287 = vsyncpa [#allocation3], 1 }

</bundles_post_ra>
